<compile_context>
chip_gen: v5e
topology: v5e:2x2
jax: 0.10.0
libtpu: 0.0.40
codegen_flags: <defaults>
</compile_context>

<pallas_src>
import functools

import jax
import jax.numpy as jnp
from jax.experimental import pallas as pl
from jax.experimental.pallas import tpu as pltpu

# (in_features, out_features) per layer, in forward order (matches Net.forward:
# fc1, fc2, fc6, fc7, fc8, fc3, fc4, fc5).
LAYER_DIMS = [(15, 32), (32, 64), (64, 128), (128, 256),
              (256, 128), (128, 32), (32, 8), (8, 1)]
PADDED_IN = 16                 # first layer padded 15 -> 16 for sublane alignment
MAX_OUT = max(d for _, d in LAYER_DIMS)   # 256, bias-pack lane width
DEFAULT_TB = 8192              # batch tile (rows); grows/shrinks with batch below
VMEM_LIMIT_BYTES = 48 * 1024 * 1024


def _round_up(n, m):
    return ((n + m - 1) // m) * m


def _has_bf16_vpu():
    """bf16 VALU exists on v6e/v7x (and newer); keep f32 elementwise on <= v5."""
    try:
        kind = jax.devices()[0].device_kind.lower()
    except Exception:
        return True
    return not any(t in kind for t in ("v2", "v3", "v4", "v5"))


def _mlp_kernel(bf16_elem, x_ref,
                w1, w2, w3, w4, w5, w6, w7, w_last,
                bias_ref, o_ref):
    """x_ref: (TB, 16) bf16.  w1..w7: bf16 (in, out) MXU weights.
    w_last: (1, 8) f32 (transposed fc5 weight, used on the VPU).
    bias_ref: (8, 256) f32 packed biases.  o_ref: (TB, 1) f32."""
    mxu_weights = (w1, w2, w3, w4, w5, w6, w7)
    n = len(LAYER_DIMS)

    h = x_ref[...]                                  # already bf16 (pre-cast in wrapper)
    for i in range(n - 1):                          # layers 1..7 on the MXU
        out_dim = LAYER_DIMS[i][1]
        z = jnp.dot(h, mxu_weights[i][...], preferred_element_type=jnp.float32)
        z = z + bias_ref[i:i + 1, :out_dim]         # (1, out) broadcasts over batch
        if i < n - 2:
            if bf16_elem:
                h = jnp.maximum(z.astype(jnp.bfloat16), 0)    # bf16 VALU (v6e/v7x)
            else:
                h = jnp.maximum(z, 0.0).astype(jnp.bfloat16)  # f32 VALU (v5e)
        else:
            h = jnp.maximum(z, 0.0)                 # (TB, 8) stays f32 for the VPU tail

    # Final 8 -> 1 layer off the MXU: broadcast multiply (VPU) + lane reduce (XLU).
    z = jnp.sum(h * w_last[...], axis=-1, keepdims=True) + bias_ref[n - 1:n, :1]

    # Stable two-branch sigmoid: exp (EUP) + approx reciprocal (EUP).
    e = jnp.exp(-jnp.abs(z))                        # in (0, 1]; never overflows
    r = pl.reciprocal(1.0 + e, approx=True)
    o_ref[...] = jnp.where(z >= 0.0, r, e * r).astype(o_ref.dtype)


def net_forward(x, params, *, tb=DEFAULT_TB):
    """x: (B, 15) float32.  params: list of (W:(in,out) f32, b:(1,out) f32)."""
    batch = x.shape[0]
    in_dim = LAYER_DIMS[0][0]
    n = len(LAYER_DIMS)

    # bf16 input, features zero-padded 15 -> 16 (matching zero row added to w1).
    x_p = jnp.pad(x.astype(jnp.bfloat16), ((0, 0), (0, PADDED_IN - in_dim)))

    # Batch tiling: multiple of 8; large tile to amortize per-step overhead,
    # capped so the grid has >= 2 steps whenever the batch allows it (v7x 2 TCs).
    b8 = _round_up(batch, 8)
    tb = min(_round_up(max(tb, 8), 8), b8)
    if b8 >= 16:
        tb = min(tb, _round_up((b8 + 1) // 2, 8))
    b_pad = _round_up(batch, tb)
    if b_pad != batch:
        x_p = jnp.pad(x_p, ((0, b_pad - batch), (0, 0)))

    # Weights: bf16 for the 7 MXU layers; last layer transposed to (1, 8) f32
    # so the kernel can do it as a VPU broadcast-multiply + lane reduction.
    flat_w = []
    for idx, (w, _) in enumerate(params):
        if idx == 0:
            w = jnp.pad(w, ((0, PADDED_IN - in_dim), (0, 0)))
        if idx == n - 1:
            flat_w.append(w.reshape(1, LAYER_DIMS[idx][0]).astype(jnp.float32))
        else:
            flat_w.append(w.astype(jnp.bfloat16))

    # Pack all 8 biases into one (8, 256) f32 array (fewer inputs, less per-step
    # bookkeeping than 8 separate tiny blocks).
    bias_pack = jnp.zeros((n, MAX_OUT), jnp.float32)
    for idx, (_, b) in enumerate(params):
        bias_pack = bias_pack.at[idx, :LAYER_DIMS[idx][1]].set(
            b.reshape(-1).astype(jnp.float32))

    grid = (b_pad // tb,)
    in_specs = [pl.BlockSpec((tb, PADDED_IN), lambda i: (i, 0))]
    for arr in flat_w:
        # Full-shape block, constant index_map -> stays resident in VMEM.
        in_specs.append(pl.BlockSpec(arr.shape, lambda i: (0, 0)))
    in_specs.append(pl.BlockSpec(bias_pack.shape, lambda i: (0, 0)))
    out_specs = pl.BlockSpec((tb, 1), lambda i: (i, 0))

    kernel = functools.partial(_mlp_kernel, _has_bf16_vpu())
    out = pl.pallas_call(
        kernel,
        out_shape=jax.ShapeDtypeStruct((b_pad, 1), jnp.float32),
        grid=grid,
        in_specs=in_specs,
        out_specs=out_specs,
        compiler_params=pltpu.CompilerParams(
            dimension_semantics=("parallel",),
            vmem_limit_bytes=VMEM_LIMIT_BYTES),
    )(x_p, *flat_w, bias_pack)
    return out[:batch]


def init_params(key):
    """Deterministic init mimicking nn.Linear's default U(-1/sqrt(in), 1/sqrt(in))."""
    params = []
    for (fan_in, fan_out) in LAYER_DIMS:
        key, kw, kb = jax.random.split(key, 3)
        bound = 1.0 / jnp.sqrt(jnp.float32(fan_in))
        w = jax.random.uniform(kw, (fan_in, fan_out), jnp.float32, -bound, bound)
        b = jax.random.uniform(kb, (1, fan_out), jnp.float32, -bound, bound)
        params.append((w, b))
    return params


def net_forward_ref(x, params):
    """Pure-JAX f32 reference for correctness checking."""
    h = x
    for i, (w, b) in enumerate(params):
        z = h @ w + b
        h = jnp.maximum(z, 0.0) if i < len(params) - 1 else jax.nn.sigmoid(z)
    return h


if __name__ == "__main__":
    key = jax.random.PRNGKey(0)
    kx, kp = jax.random.split(key)

    # Small but non-trivial: exercises batch padding (250 -> 256) and a 2-step
    # "parallel" grid (tb = 128).
    batch = 250
    x = jax.random.normal(kx, (batch, 15), jnp.float32)
    params = init_params(kp)

    out = jax.block_until_ready(net_forward(x, params))

    ref = net_forward_ref(x, params)
    assert out.shape == (batch, 1)
    # bf16 matmuls + approx reciprocal vs f32 reference: small abs error on the
    # sigmoid output.
    err = float(jnp.max(jnp.abs(out - ref)))
    assert err < 4e-2, f"mismatch vs reference (max abs err {err})"

    print("KERNEL_OK")
</pallas_src>

<mosaic_0001>
module attributes {stable_mosaic.version = 11 : i64} {
  func.func @_mlp_kernel(%arg0: i32, %arg1: memref<128x16xbf16, #tpu.memory_space<vmem>>, %arg2: memref<16x32xbf16, #tpu.memory_space<vmem>>, %arg3: memref<32x64xbf16, #tpu.memory_space<vmem>>, %arg4: memref<64x128xbf16, #tpu.memory_space<vmem>>, %arg5: memref<128x256xbf16, #tpu.memory_space<vmem>>, %arg6: memref<256x128xbf16, #tpu.memory_space<vmem>>, %arg7: memref<128x32xbf16, #tpu.memory_space<vmem>>, %arg8: memref<32x8xbf16, #tpu.memory_space<vmem>>, %arg9: memref<1x8xf32, #tpu.memory_space<vmem>>, %arg10: memref<8x256xf32, #tpu.memory_space<vmem>>, %arg11: memref<128x1xf32, #tpu.memory_space<vmem>>) attributes {dimension_semantics = [#tpu.dimension_semantics<parallel>], iteration_bounds = array<i64: 2>, scalar_prefetch = 0 : i64, scratch_operands = 0 : i64, tpu.core_type = #tpu.core_type<tc>, window_params = [{transform_indices = @transform_0, window_bounds = array<i64: 128, 16>}, {pipeline_mode = #tpu.pipeline_mode<synchronous>, transform_indices = @transform_1, window_bounds = array<i64: 16, 32>}, {pipeline_mode = #tpu.pipeline_mode<synchronous>, transform_indices = @transform_2, window_bounds = array<i64: 32, 64>}, {pipeline_mode = #tpu.pipeline_mode<synchronous>, transform_indices = @transform_3, window_bounds = array<i64: 64, 128>}, {pipeline_mode = #tpu.pipeline_mode<synchronous>, transform_indices = @transform_4, window_bounds = array<i64: 128, 256>}, {pipeline_mode = #tpu.pipeline_mode<synchronous>, transform_indices = @transform_5, window_bounds = array<i64: 256, 128>}, {pipeline_mode = #tpu.pipeline_mode<synchronous>, transform_indices = @transform_6, window_bounds = array<i64: 128, 32>}, {pipeline_mode = #tpu.pipeline_mode<synchronous>, transform_indices = @transform_7, window_bounds = array<i64: 32, 8>}, {pipeline_mode = #tpu.pipeline_mode<synchronous>, transform_indices = @transform_8, window_bounds = array<i64: 1, 8>}, {pipeline_mode = #tpu.pipeline_mode<synchronous>, transform_indices = @transform_9, window_bounds = array<i64: 8, 256>}, {transform_indices = @transform_10, window_bounds = array<i64: 128, 1>}]} {
    %c0 = arith.constant 0 : index
    %c0_0 = arith.constant 0 : index
    %0 = vector.load %arg1[%c0, %c0_0] : memref<128x16xbf16, #tpu.memory_space<vmem>>, vector<128x16xbf16>
    %c0_1 = arith.constant 0 : index
    %c0_2 = arith.constant 0 : index
    %1 = vector.load %arg2[%c0_1, %c0_2] : memref<16x32xbf16, #tpu.memory_space<vmem>>, vector<16x32xbf16>
    %cst = arith.constant dense<0.000000e+00> : vector<128x32xf32>
    %2 = tpu.matmul %0, %1, %cst {dimension_numbers = #tpu.dot_dimension_numbers<[1], [0], [0], [1], [0, 0, 1, 1], [], []>} : vector<128x16xbf16>, vector<16x32xbf16>, vector<128x32xf32> -> vector<128x32xf32>
    %c0_3 = arith.constant 0 : index
    %c0_4 = arith.constant 0 : index
    %3 = vector.load %arg10[%c0_3, %c0_4] : memref<8x256xf32, #tpu.memory_space<vmem>>, vector<1x32xf32>
    %4 = vector.broadcast %3 : vector<1x32xf32> to vector<128x32xf32>
    %5 = arith.addf %2, %4 : vector<128x32xf32>
    %6 = arith.truncf %5 : vector<128x32xf32> to vector<128x32xbf16>
    %cst_5 = arith.constant 0.000000e+00 : bf16
    %7 = vector.broadcast %cst_5 : bf16 to vector<128x32xbf16>
    %8 = arith.maximumf %6, %7 : vector<128x32xbf16>
    %c0_6 = arith.constant 0 : index
    %c0_7 = arith.constant 0 : index
    %9 = vector.load %arg3[%c0_6, %c0_7] : memref<32x64xbf16, #tpu.memory_space<vmem>>, vector<32x64xbf16>
    %cst_8 = arith.constant dense<0.000000e+00> : vector<128x64xf32>
    %10 = tpu.matmul %8, %9, %cst_8 {dimension_numbers = #tpu.dot_dimension_numbers<[1], [0], [0], [1], [0, 0, 1, 1], [], []>} : vector<128x32xbf16>, vector<32x64xbf16>, vector<128x64xf32> -> vector<128x64xf32>
    %c1 = arith.constant 1 : index
    %c0_9 = arith.constant 0 : index
    %11 = vector.load %arg10[%c1, %c0_9] : memref<8x256xf32, #tpu.memory_space<vmem>>, vector<1x64xf32>
    %12 = vector.broadcast %11 : vector<1x64xf32> to vector<128x64xf32>
    %13 = arith.addf %10, %12 : vector<128x64xf32>
    %14 = arith.truncf %13 : vector<128x64xf32> to vector<128x64xbf16>
    %cst_10 = arith.constant 0.000000e+00 : bf16
    %15 = vector.broadcast %cst_10 : bf16 to vector<128x64xbf16>
    %16 = arith.maximumf %14, %15 : vector<128x64xbf16>
    %c0_11 = arith.constant 0 : index
    %c0_12 = arith.constant 0 : index
    %17 = vector.load %arg4[%c0_11, %c0_12] : memref<64x128xbf16, #tpu.memory_space<vmem>>, vector<64x128xbf16>
    %cst_13 = arith.constant dense<0.000000e+00> : vector<128x128xf32>
    %18 = tpu.matmul %16, %17, %cst_13 {dimension_numbers = #tpu.dot_dimension_numbers<[1], [0], [0], [1], [0, 0, 1, 1], [], []>} : vector<128x64xbf16>, vector<64x128xbf16>, vector<128x128xf32> -> vector<128x128xf32>
    %c2 = arith.constant 2 : index
    %c0_14 = arith.constant 0 : index
    %19 = vector.load %arg10[%c2, %c0_14] : memref<8x256xf32, #tpu.memory_space<vmem>>, vector<1x128xf32>
    %20 = vector.broadcast %19 : vector<1x128xf32> to vector<128x128xf32>
    %21 = arith.addf %18, %20 : vector<128x128xf32>
    %22 = arith.truncf %21 : vector<128x128xf32> to vector<128x128xbf16>
    %cst_15 = arith.constant 0.000000e+00 : bf16
    %23 = vector.broadcast %cst_15 : bf16 to vector<128x128xbf16>
    %24 = arith.maximumf %22, %23 : vector<128x128xbf16>
    %c0_16 = arith.constant 0 : index
    %c0_17 = arith.constant 0 : index
    %25 = vector.load %arg5[%c0_16, %c0_17] : memref<128x256xbf16, #tpu.memory_space<vmem>>, vector<128x256xbf16>
    %cst_18 = arith.constant dense<0.000000e+00> : vector<128x256xf32>
    %26 = tpu.matmul %24, %25, %cst_18 {dimension_numbers = #tpu.dot_dimension_numbers<[1], [0], [0], [1], [0, 0, 1, 1], [], []>} : vector<128x128xbf16>, vector<128x256xbf16>, vector<128x256xf32> -> vector<128x256xf32>
    %c3 = arith.constant 3 : index
    %c0_19 = arith.constant 0 : index
    %27 = vector.load %arg10[%c3, %c0_19] : memref<8x256xf32, #tpu.memory_space<vmem>>, vector<1x256xf32>
    %28 = vector.broadcast %27 : vector<1x256xf32> to vector<128x256xf32>
    %29 = arith.addf %26, %28 : vector<128x256xf32>
    %30 = arith.truncf %29 : vector<128x256xf32> to vector<128x256xbf16>
    %cst_20 = arith.constant 0.000000e+00 : bf16
    %31 = vector.broadcast %cst_20 : bf16 to vector<128x256xbf16>
    %32 = arith.maximumf %30, %31 : vector<128x256xbf16>
    %c0_21 = arith.constant 0 : index
    %c0_22 = arith.constant 0 : index
    %33 = vector.load %arg6[%c0_21, %c0_22] : memref<256x128xbf16, #tpu.memory_space<vmem>>, vector<256x128xbf16>
    %cst_23 = arith.constant dense<0.000000e+00> : vector<128x128xf32>
    %34 = tpu.matmul %32, %33, %cst_23 {dimension_numbers = #tpu.dot_dimension_numbers<[1], [0], [0], [1], [0, 0, 1, 1], [], []>} : vector<128x256xbf16>, vector<256x128xbf16>, vector<128x128xf32> -> vector<128x128xf32>
    %c4 = arith.constant 4 : index
    %c0_24 = arith.constant 0 : index
    %35 = vector.load %arg10[%c4, %c0_24] : memref<8x256xf32, #tpu.memory_space<vmem>>, vector<1x128xf32>
    %36 = vector.broadcast %35 : vector<1x128xf32> to vector<128x128xf32>
    %37 = arith.addf %34, %36 : vector<128x128xf32>
    %38 = arith.truncf %37 : vector<128x128xf32> to vector<128x128xbf16>
    %cst_25 = arith.constant 0.000000e+00 : bf16
    %39 = vector.broadcast %cst_25 : bf16 to vector<128x128xbf16>
    %40 = arith.maximumf %38, %39 : vector<128x128xbf16>
    %c0_26 = arith.constant 0 : index
    %c0_27 = arith.constant 0 : index
    %41 = vector.load %arg7[%c0_26, %c0_27] : memref<128x32xbf16, #tpu.memory_space<vmem>>, vector<128x32xbf16>
    %cst_28 = arith.constant dense<0.000000e+00> : vector<128x32xf32>
    %42 = tpu.matmul %40, %41, %cst_28 {dimension_numbers = #tpu.dot_dimension_numbers<[1], [0], [0], [1], [0, 0, 1, 1], [], []>} : vector<128x128xbf16>, vector<128x32xbf16>, vector<128x32xf32> -> vector<128x32xf32>
    %c5 = arith.constant 5 : index
    %c0_29 = arith.constant 0 : index
    %43 = vector.load %arg10[%c5, %c0_29] : memref<8x256xf32, #tpu.memory_space<vmem>>, vector<1x32xf32>
    %44 = vector.broadcast %43 : vector<1x32xf32> to vector<128x32xf32>
    %45 = arith.addf %42, %44 : vector<128x32xf32>
    %46 = arith.truncf %45 : vector<128x32xf32> to vector<128x32xbf16>
    %cst_30 = arith.constant 0.000000e+00 : bf16
    %47 = vector.broadcast %cst_30 : bf16 to vector<128x32xbf16>
    %48 = arith.maximumf %46, %47 : vector<128x32xbf16>
    %c0_31 = arith.constant 0 : index
    %c0_32 = arith.constant 0 : index
    %49 = vector.load %arg8[%c0_31, %c0_32] : memref<32x8xbf16, #tpu.memory_space<vmem>>, vector<32x8xbf16>
    %cst_33 = arith.constant dense<0.000000e+00> : vector<128x8xf32>
    %50 = tpu.matmul %48, %49, %cst_33 {dimension_numbers = #tpu.dot_dimension_numbers<[1], [0], [0], [1], [0, 0, 1, 1], [], []>} : vector<128x32xbf16>, vector<32x8xbf16>, vector<128x8xf32> -> vector<128x8xf32>
    %c6 = arith.constant 6 : index
    %c0_34 = arith.constant 0 : index
    %51 = vector.load %arg10[%c6, %c0_34] : memref<8x256xf32, #tpu.memory_space<vmem>>, vector<1x8xf32>
    %52 = vector.broadcast %51 : vector<1x8xf32> to vector<128x8xf32>
    %53 = arith.addf %50, %52 : vector<128x8xf32>
    %cst_35 = arith.constant 0.000000e+00 : f32
    %54 = vector.broadcast %cst_35 : f32 to vector<128x8xf32>
    %55 = arith.maximumf %53, %54 : vector<128x8xf32>
    %c0_36 = arith.constant 0 : index
    %c0_37 = arith.constant 0 : index
    %56 = vector.load %arg9[%c0_36, %c0_37] : memref<1x8xf32, #tpu.memory_space<vmem>>, vector<1x8xf32>
    %57 = vector.broadcast %56 : vector<1x8xf32> to vector<128x8xf32>
    %58 = arith.mulf %55, %57 : vector<128x8xf32>
    %cst_38 = arith.constant dense<0.000000e+00> : vector<128xf32>
    %59 = vector.multi_reduction <add>, %58, %cst_38 [1] : vector<128x8xf32> to vector<128xf32>
    %60 = vector.shape_cast %59 : vector<128xf32> to vector<128x1xf32>
    %c7 = arith.constant 7 : index
    %c0_39 = arith.constant 0 : index
    %61 = vector.load %arg10[%c7, %c0_39] : memref<8x256xf32, #tpu.memory_space<vmem>>, vector<1x1xf32>
    %62 = vector.broadcast %61 : vector<1x1xf32> to vector<128x1xf32>
    %63 = arith.addf %60, %62 : vector<128x1xf32>
    %64 = math.absf %63 : vector<128x1xf32>
    %cst_40 = arith.constant 0.000000e+00 : f32
    %65 = vector.broadcast %cst_40 : f32 to vector<128x1xf32>
    %66 = arith.subf %65, %64 : vector<128x1xf32>
    %67 = math.exp %66 : vector<128x1xf32>
    %cst_41 = arith.constant 1.000000e+00 : f32
    %68 = vector.broadcast %cst_41 : f32 to vector<128x1xf32>
    %69 = arith.addf %68, %67 : vector<128x1xf32>
    %70 = tpu.reciprocal %69 {approx = true} : vector<128x1xf32> -> vector<128x1xf32>
    %cst_42 = arith.constant 0.000000e+00 : f32
    %71 = vector.broadcast %cst_42 : f32 to vector<128x1xf32>
    %72 = arith.cmpf oge, %63, %71 : vector<128x1xf32>
    %73 = arith.mulf %67, %70 : vector<128x1xf32>
    %74 = arith.select %72, %70, %73 : vector<128x1xi1>, vector<128x1xf32>
    %c0_43 = arith.constant 0 : index
    %c0_44 = arith.constant 0 : index
    %75 = vector.load %arg11[%c0_43, %c0_44] : memref<128x1xf32, #tpu.memory_space<vmem>>, vector<128x1xf32>
    tpu.vector_store %arg11[%c0_43, %c0_44], %74 {strides = array<i32>} : memref<128x1xf32, #tpu.memory_space<vmem>>, vector<128x1xf32>,
    return
  }
  func.func @transform_0(%arg0: i32) -> (i32, i32) {
    %c0_i32 = arith.constant 0 : i32
    %c0_i32_0 = arith.constant 0 : i32
    return %arg0, %c0_i32 : i32, i32
  }
  func.func @transform_1(%arg0: i32) -> (i32, i32) {
    %c0_i32 = arith.constant 0 : i32
    %c0_i32_0 = arith.constant 0 : i32
    %c0_i32_1 = arith.constant 0 : i32
    return %c0_i32, %c0_i32_0 : i32, i32
  }
  func.func @transform_2(%arg0: i32) -> (i32, i32) {
    %c0_i32 = arith.constant 0 : i32
    %c0_i32_0 = arith.constant 0 : i32
    %c0_i32_1 = arith.constant 0 : i32
    return %c0_i32, %c0_i32_0 : i32, i32
  }
  func.func @transform_3(%arg0: i32) -> (i32, i32) {
    %c0_i32 = arith.constant 0 : i32
    %c0_i32_0 = arith.constant 0 : i32
    %c0_i32_1 = arith.constant 0 : i32
    return %c0_i32, %c0_i32_0 : i32, i32
  }
  func.func @transform_4(%arg0: i32) -> (i32, i32) {
    %c0_i32 = arith.constant 0 : i32
    %c0_i32_0 = arith.constant 0 : i32
    %c0_i32_1 = arith.constant 0 : i32
    return %c0_i32, %c0_i32_0 : i32, i32
  }
  func.func @transform_5(%arg0: i32) -> (i32, i32) {
    %c0_i32 = arith.constant 0 : i32
    %c0_i32_0 = arith.constant 0 : i32
    %c0_i32_1 = arith.constant 0 : i32
    return %c0_i32, %c0_i32_0 : i32, i32
  }
  func.func @transform_6(%arg0: i32) -> (i32, i32) {
    %c0_i32 = arith.constant 0 : i32
    %c0_i32_0 = arith.constant 0 : i32
    %c0_i32_1 = arith.constant 0 : i32
    return %c0_i32, %c0_i32_0 : i32, i32
  }
  func.func @transform_7(%arg0: i32) -> (i32, i32) {
    %c0_i32 = arith.constant 0 : i32
    %c0_i32_0 = arith.constant 0 : i32
    %c0_i32_1 = arith.constant 0 : i32
    return %c0_i32, %c0_i32_0 : i32, i32
  }
  func.func @transform_8(%arg0: i32) -> (i32, i32) {
    %c0_i32 = arith.constant 0 : i32
    %c0_i32_0 = arith.constant 0 : i32
    %c0_i32_1 = arith.constant 0 : i32
    return %c0_i32, %c0_i32_0 : i32, i32
  }
  func.func @transform_9(%arg0: i32) -> (i32, i32) {
    %c0_i32 = arith.constant 0 : i32
    %c0_i32_0 = arith.constant 0 : i32
    %c0_i32_1 = arith.constant 0 : i32
    return %c0_i32, %c0_i32_0 : i32, i32
  }
  func.func @transform_10(%arg0: i32) -> (i32, i32) {
    %c0_i32 = arith.constant 0 : i32
    %c0_i32_0 = arith.constant 0 : i32
    return %arg0, %c0_i32 : i32, i32
  }
}

</mosaic_0001>

<bundles_post_ra>
// kernel: tpu_custom_call.1
= control target key start
LH: loop header
LB: loop body
LE: loop exit
PB: predicated region body
PF: predicated region fallthrough
CT: control target
= control target key end

     0   :  { %15 = vsyncpa [#allocation3], 0  ;;  %s2577_s13 = smov 0   ;;  %s3019_s0 = inlined_call_operand.vmem [shape: bf16[256,16], index: 0, kind: input, shape index: {}]   ;;  %s3020_s1 = inlined_call_operand.vmem [shape: bf16[16,32], index: 1, kind: input, shape index: {}]   ;;  %s3021_s2 = inlined_call_operand.vmem [shape: bf16[32,64], index: 2, kind: input, shape index: {}]   ;;  %s3022_s3 = inlined_call_operand.vmem [shape: bf16[64,128], index: 3, kind: input, shape index: {}]   ;;  %s3023_s4 = inlined_call_operand.vmem [shape: bf16[128,256], index: 4, kind: input, shape index: {}]   ;;  %s3024_s5 = inlined_call_operand.hbm [shape: bf16[256,128], index: 5, kind: input, shape index: {}]   ;;  %s3025_s6 = inlined_call_operand.vmem [shape: bf16[128,32], index: 6, kind: input, shape index: {}]   ;;  %s3026_s7 = inlined_call_operand.vmem [shape: bf16[32,8], index: 7, kind: input, shape index: {}]   ;;  %s3027_s8 = inlined_call_operand.vmem [shape: f32[1,8], index: 8, kind: input, shape index: {}]   ;;  %s3028_s9 = inlined_call_operand.vmem [shape: f32[8,256], index: 9, kind: input, shape index: {}]   ;;  %s3029_s10 = inlined_call_operand.vmem [shape: f32[256,1], index: 10, kind: output, shape index: {}]  }
   0x1 LB: > { %s290_s16 = sshll.u32 %s3024_s5, 4  ;;  %s2057_s17 = sadd.s32 4294967295, %s2517_s13   ;;  %s2517_s13 = sphi %s2577_s13, %s21_s13   ;;  %s291_s16 = int_to_ptr.hbm [resolvable:$true] %s290_s16 }
   0x2   : > { %p2059_p0 = scmp.ge.s32.totalorder %s2517_s13, 1  ;;  %p267_p1 = scmp.lt.s32.totalorder %s2517_s13, 3 }
   0x3   : > { %p2399_p2 = scmp.eq.s32.totalorder %s2057_s17, 0  ;;  %s2519_s18 = smov [#allocation2]  }
   0x4   : > { %p268_p3 = pnand %p2059_p0, %p267_p1  ;;  %s292_s19 = sshll.u32 %s2519_s18, 4  ;;  %s293_s19 = int_to_ptr.vmem [resolvable:$true] %s292_s19 }
   0x5   : > { %s2520_s20 = smov 64   ;;  %s2521_s21 = smov 4  }
   0x6   : > { %p2395_p4 = pneg %p268_p3  ;;  %329 = sbr.rel (%p268_p3) target bundleno = 1276 (0x4fc), region = 60 }
   0x8   : > { %p2396_p5 = pnand %p2399_p2, %p2395_p4 }
   0xa   : > { %2398 = dma.hbm_to_vmem [thread:$0]  (!%p2396_p5), %s291_s16, 2048, %s293_s19, [#allocation3], %s2520_s20, %s2520_s20, %s2521_s21  }
   0xb   : > { %2512 = dma.done.wait (%p2399_p2), [#allocation3], 2048  }
   0xc   : > { %2514 = vsyncadd (%p2399_p2), [#allocation3], 4294965248  ;;  %s2064_s22 = sshll.u32 %s2057_s17, 4  ;;  %v2339_v0 = vld [vmem:[%s3020_s1] sm:$0xff]  ;;  %vm446_vm0 = vcmask 130048   ;;  %v2341_v4 = vld [vmem:[%s3021_s2 + $0x8] sm:$0xff] }
   0xd   : > { %p369_p6 = scmp.lt.s32.totalorder %s2064_s22, 31  ;;  %478 = vmatpush.bf16.msra.mxu0 %v2339_v0  ;;  %2388 = vmatpush.bf16.msra.mxu1 %v2339_v0  ;;  %v2340_v6 = vld [vmem:[%s3021_s2] sm:$0xff]  ;;  %vm593_vm1 = vcmask 261120   ;;  %v2345_v49 = vld [vmem:[%s3022_s3 + $0x18] sm:$0xff]  ;;  %v2344_v56 = vld [vmem:[%s3022_s3 + $0x10] sm:$0xff]  ;;  %vm756_vm2 = vcmask 523264  }
   0xe   : > { %2389 = vmatpush.bf16.msra.mxu2 %v2339_v0  ;;  %2390 = vmatpush.bf16.msra.mxu3 %v2339_v0  ;;  %v2614_v12 = vld [vmem:[%s3028_s9] ss:$0 sm:$0xff]  ;;  %v2343_v57 = vld [vmem:[%s3022_s3 + $0x8] sm:$0xff]  ;;  %vm1762_vm3 = vcmask 64512   ;;  %vm1972_vm4 = vcmask 7168  }
   0xf   : > { %s3031_s22 = smov (!%p369_p6, %s2064_s22), 31 }
  0x10   : > { %s2065_s23 = sshll.u32 %s3031_s22, 2  ;;  %s2067_s16 = sshll.u32 %s3031_s22, 3 }
  0x11   : > { %s372_s26 = scalar_lea.vmem %s3019_s0, %s2065_s23  ;;  %624 = vmatpush.bf16.msrb.mxu1 %v2341_v4  ;;  %s2969_s19 = scalar_lea.vmem %s3029_s10, %s2067_s16 }
  0x12   : > { %v2331_v1 = vld [vmem:[%s372_s26] sm:$0xff]  ;;  %v2333_v2 = vld [vmem:[%s372_s26 + $0x10] sm:$0xff]  ;;  %v2336_v3 = vld [vmem:[%s372_s26 + $0x28] sm:$0xff]  ;;  %785 = vmatpush.bf16.msrb.mxu2 %v2345_v49 }
  0x13   : > { %2104 = vmatmul.msk.bf16.vlgmr.msra.gmra.mxu0 %vm446_vm0, %v2331_v1  ;;  %2106 = vmatmul.msk.bf16.vlgmr.msra.gmra.mxu1 %vm446_vm0, %v2333_v2  ;;  %v2338_v5 = vld [vmem:[%s372_s26 + $0x38] sm:$0xff]  ;;  %v2332_v7 = vld [vmem:[%s372_s26 + $0x8] sm:$0xff]  ;;  %v2337_v9 = vld [vmem:[%s372_s26 + $0x30] sm:$0xff] }
  0x14   : > { %2109 = vmatmul.msk.bf16.vlgmr.msra.gmra.mxu2 %vm446_vm0, %v2336_v3  ;;  %2111 = vmatmul.msk.bf16.vlgmr.msra.gmra.mxu3 %vm446_vm0, %v2338_v5  ;;  %v2334_v8 = vld [vmem:[%s372_s26 + $0x18] sm:$0xff]  ;;  %v2335_v10 = vld [vmem:[%s372_s26 + $0x20] sm:$0xff] }
  0x15   : > { %625 = vmatpush.bf16.msrb.mxu1 %v2340_v6  ;;  %v2342_v1 = vld [vmem:[%s3022_s3] sm:$0xff] }
  0x16   : > { %786 = vmatpush.bf16.msrb.mxu2 %v2344_v56  ;;  %v2213_v56 = vld [vmem:[%s3023_s4 + $0x78] sm:$0xf0] }
  0x1a   : > { %787 = vmatpush.bf16.msrb.mxu2 %v2343_v57  ;;  %v2203_v57 = vld [vmem:[%s3023_s4 + $0x60] sm:$0xf] }
  0x1e   : > { %788 = vmatpush.bf16.msrb.mxu2 %v2342_v1  ;;  %v2357_v1 = vld [vmem:[%s3023_s4 + $0x54] sm:$0xf0] }
  0x23   : > { %2105 = vmatmul.msk.bf16.gmra.mxu0 %vm446_vm0, %v2332_v7  ;;  %2107 = vmatmul.msk.bf16.gmra.mxu1 %vm446_vm0, %v2334_v8 }
  0x24   : > { %2110 = vmatmul.msk.bf16.gmra.mxu2 %vm446_vm0, %v2337_v9  ;;  %v2655_v9 = vld [vmem:[%s3028_s9 + $0x1] ss:$0 sm:$0xff] }
  0x33   : > { %2108 = vmatmul.msk.bf16.gmra.mxu1 %vm446_vm0, %v2335_v10 }
  0x90   : > { %v480_v11 = vpop.f32.mrf.mxu0  ;;  %v490_v20 = vpop.f32.mrf.mxu1 }
  0x91   : > { %v481_v13 = vadd.f32 %v480_v11, %v2614_v12  ;;  %v491_v29 = vadd.f32 %v490_v20, %v2614_v12 }
  0x93   : > { %v552_v16 = vmax.f32 %v481_v13, 0.0  ;;  %v556_v31 = vmax.f32 %v491_v29, 0.0 }
  0x97   : > { %v505_v42 = vpop.f32.mrf.mxu2  ;;  %v515_v61 = vpop.f32.mrf.mxu3 }
  0x98   : > { %v482_v14 = vpop.f32.mrf.mxu0  ;;  %v492_v24 = vpop.f32.mrf.mxu1  ;;  %v506_v50 = vadd.f32 %v505_v42, %v2614_v12  ;;  %v516_v3 = vadd.f32 %v515_v61, %v2614_v12  ;;  %v2205_v61 = vld [vmem:[%s3023_s4 + $0x68] sm:$0xf0] }
  0x99   : > { %v483_v15 = vadd.f32 %v482_v14, %v2614_v12  ;;  %v493_v30 = vadd.f32 %v492_v24, %v2614_v12 }
  0x9a   : > { %v562_v53 = vmax.f32 %v506_v50, 0.0  ;;  %v566_v5 = vmax.f32 %v516_v3, 0.0  ;;  %v2197_v3 = vld [vmem:[%s3023_s4 + $0x58] sm:$0xf0] }
  0x9b   : > { %v553_v17 = vmax.f32 %v483_v15, 0.0  ;;  %v557_v32 = vmax.f32 %v493_v30, 0.0 }
  0x9d   : > { %v568_v18 = vpack.c.bf16 %v553_v17, %v552_v16  ;;  %v570_v33 = vpack.c.bf16 %v557_v32, %v556_v31 }
  0x9f   : > { %2120 = vmatmul.msk.bf16.vlgmr.msrb.gmra.mxu1 %vm593_vm1, %v568_v18  ;;  %v507_v48 = vpop.f32.mrf.mxu2  ;;  %v517_v2 = vpop.f32.mrf.mxu3 }
  0xa0   : > { %v485_v19 = vpop.f32.mrf.mxu0  ;;  %v495_v28 = vpop.f32.mrf.mxu1  ;;  %v508_v51 = vadd.f32 %v507_v48, %v2614_v12  ;;  %v518_v4 = vadd.f32 %v517_v2, %v2614_v12  ;;  %v2356_v2 = vld [vmem:[%s3023_s4 + $0x54] sm:$0xf] }
  0xa1   : > { %v486_v21 = vadd.f32 %v485_v19, %v2614_v12  ;;  %v496_v35 = vadd.f32 %v495_v28, %v2614_v12 }
  0xa2   : > { %v563_v54 = vmax.f32 %v508_v51, 0.0  ;;  %v567_v6 = vmax.f32 %v518_v4, 0.0  ;;  %v2211_v51 = vld [vmem:[%s3023_s4 + $0x70] sm:$0xf] }
  0xa3   : > { %v554_v25 = vmax.f32 %v486_v21, 0.0  ;;  %v558_v38 = vmax.f32 %v496_v35, 0.0 }
  0xa4   : > { %v573_v55 = vpack.c.bf16 %v563_v54, %v562_v53  ;;  %v575_v7 = vpack.c.bf16 %v567_v6, %v566_v5  ;;  %v2360_v53 = vld [vmem:[%s3023_s4 + $0x74] sm:$0xf]  ;;  %v2200_v6 = vor.u32 %v2356_v2, %v2197_v3  ;;  %v2375_v3 = vld [vmem:[#allocation2 + $0x68] sm:$0xff] }
  0xa7   : > { %v510_v52 = vpop.f32.mrf.mxu2 }
  0xa8   : > { %v487_v22 = vpop.f32.mrf.mxu0  ;;  %v497_v34 = vpop.f32.mrf.mxu1  ;;  %v511_v59 = vadd.f32 %v510_v52, %v2614_v12  ;;  %v2361_v52 = vld [vmem:[%s3023_s4 + $0x74] sm:$0xf0] }
  0xa9   : > { %v488_v23 = vadd.f32 %v487_v22, %v2614_v12  ;;  %v498_v36 = vadd.f32 %v497_v34, %v2614_v12 }
  0xaa   : > { %v564_v62 = vmax.f32 %v511_v59, 0.0  ;;  %v2216_v59 = vor.u32 %v2360_v53, %v2213_v56 }
  0xab   : > { %v555_v26 = vmax.f32 %v488_v23, 0.0  ;;  %v559_v39 = vmax.f32 %v498_v36, 0.0 }
  0xac   : > { %1038 = vmatpush.bf16.msrb.mxu0 %v2216_v59 }
  0xad   : > { %v569_v27 = vpack.c.bf16 %v555_v26, %v554_v25  ;;  %v571_v40 = vpack.c.bf16 %v559_v39, %v558_v38 }
  0xaf   : > { %2121 = vmatmul.msk.bf16.gmra.mxu1 %vm593_vm1, %v569_v27  ;;  %v512_v58 = vpop.f32.mrf.mxu2 }
  0xb0   : > { %v500_v37 = vpop.f32.mrf.mxu1  ;;  %v513_v60 = vadd.f32 %v512_v58, %v2614_v12  ;;  %v2359_v58 = vld [vmem:[%s3023_s4 + $0x64] sm:$0xf0] }
  0xb1   : > { %v501_v43 = vadd.f32 %v500_v37, %v2614_v12 }
  0xb2   : > { %v565_v63 = vmax.f32 %v513_v60, 0.0  ;;  %v2358_v60 = vld [vmem:[%s3023_s4 + $0x64] sm:$0xf] }
  0xb3   : > { %v560_v45 = vmax.f32 %v501_v43, 0.0 }
  0xb4   : > { %v574_v0 = vpack.c.bf16 %v565_v63, %v564_v62  ;;  %v2204_v62 = vor.u32 %v2359_v58, %v2203_v57  ;;  %v2208_v63 = vor.u32 %v2358_v60, %v2205_v61  ;;  %v2376_v58 = vld [vmem:[#allocation2 + $0x70] sm:$0xff] }
  0xb5   : > { %v2368_v61 = vld [vmem:[#allocation2 + $0x30] sm:$0xff] }
  0xb6   : > { %1039 = vmatpush.bf16.msrb.mxu0 %v2208_v63 }
  0xb8   : > { %v502_v41 = vpop.f32.mrf.mxu1 }
  0xb9   : > { %v503_v44 = vadd.f32 %v502_v41, %v2614_v12 }
  0xba   : > { %1040 = vmatpush.bf16.msrb.mxu0 %v2200_v6  ;;  %v2367_v6 = vld [vmem:[#allocation2 + $0x28] sm:$0xff] }
  0xbb   : > { %v561_v46 = vmax.f32 %v503_v44, 0.0 }
  0xbd   : > { %v572_v47 = vpack.c.bf16 %v561_v46, %v560_v45 }
  0xbf   : > { %2122 = vmatmul.msk.bf16.gmra.mxu1 %vm593_vm1, %v570_v33 }
  0xcf   : > { %2123 = vmatmul.msk.bf16.gmra.mxu1 %vm593_vm1, %v571_v40 }
  0xdf   : > { %2124 = vmatmul.msk.bf16.gmra.mxu1 %vm593_vm1, %v572_v47 }
  0xef   : > { %2125 = vmatmul.msk.bf16.gmra.mxu1 %vm593_vm1, %v573_v55  ;;  %v2212_v55 = vor.u32 %v2361_v52, %v2211_v51  ;;  %v2369_v51 = vld [vmem:[#allocation2 + $0x38] sm:$0xff]  ;;  %v2780_v52 = vld [vmem:[%s3028_s9 + $0x2] ss:$0 sm:$0xff] }
  0xf0   : > { %1312 = vmatpush.bf16.msra.mxu1 %v2369_v51 }
  0xf1   : > { %989 = vmatpush.bf16.msrb.mxu3 %v2212_v55 }
  0xf4   : > { %1313 = vmatpush.bf16.msra.mxu1 %v2368_v61 }
  0xf5   : > { %990 = vmatpush.bf16.msrb.mxu3 %v2204_v62 }
  0xf8   : > { %1314 = vmatpush.bf16.msra.mxu1 %v2367_v6 }
  0xff   : > { %2126 = vmatmul.msk.bf16.gmra.mxu1 %vm593_vm1, %v574_v0  ;;  %v2195_v0 = vld [vmem:[%s3023_s4 + $0x50] sm:$0xf] }
 0x100   : > { %v2196_v4 = vor.u32 %v2357_v1, %v2195_v0 }
 0x102   : > { %991 = vmatpush.bf16.msrb.mxu3 %v2196_v4 }
 0x10f   : > { %2127 = vmatmul.msk.bf16.gmra.mxu1 %vm593_vm1, %v575_v7  ;;  %v2187_v7 = vld [vmem:[%s3023_s4 + $0x40] sm:$0xf] }
 0x11c   : > { %v627_v8 = vpop.f32.mrf.mxu1 }
 0x11d   : > { %v628_v10 = vadd.f32 %v627_v8, %v2655_v9  ;;  %v2355_v8 = vld [vmem:[%s3023_s4 + $0x44] sm:$0xf0] }
 0x11f   : > { %v699_v14 = vmax.f32 %v628_v10, 0.0 }
 0x124   : > { %v629_v11 = vpop.f32.mrf.mxu1 }
 0x125   : > { %v630_v13 = vadd.f32 %v629_v11, %v2655_v9  ;;  %v2354_v11 = vld [vmem:[%s3023_s4 + $0x44] sm:$0xf] }
 0x127   : > { %v700_v15 = vmax.f32 %v630_v13, 0.0  ;;  %v2189_v13 = vld [vmem:[%s3023_s4 + $0x48] sm:$0xf0] }
 0x129   : > { %v715_v12 = vpack.c.bf16 %v700_v15, %v699_v14  ;;  %v2188_v15 = vor.u32 %v2355_v8, %v2187_v7 }
 0x12b   : > { %2144 = vmatmul.msk.bf16.vlgmr.msrb.gmra.mxu2 %vm756_vm2, %v715_v12  ;;  %992 = vmatpush.bf16.msrb.mxu3 %v2188_v15 }
 0x12c   : > { %v632_v16 = vpop.f32.mrf.mxu1 }
 0x12d   : > { %v633_v17 = vadd.f32 %v632_v16, %v2655_v9 }
 0x12f   : > { %v701_v20 = vmax.f32 %v633_v17, 0.0  ;;  %v2192_v17 = vor.u32 %v2354_v11, %v2189_v13 }
 0x131   : > { %1041 = vmatpush.bf16.msrb.mxu0 %v2192_v17 }
 0x134   : > { %v634_v18 = vpop.f32.mrf.mxu1 }
 0x135   : > { %v635_v19 = vadd.f32 %v634_v18, %v2655_v9 }
 0x137   : > { %v702_v21 = vmax.f32 %v635_v19, 0.0  ;;  %v2179_v19 = vld [vmem:[%s3023_s4 + $0x30] sm:$0xf] }
 0x139   : > { %v716_v22 = vpack.c.bf16 %v702_v21, %v701_v20  ;;  %v2353_v20 = vld [vmem:[%s3023_s4 + $0x34] sm:$0xf0]  ;;  %v2352_v21 = vld [vmem:[%s3023_s4 + $0x34] sm:$0xf] }
 0x13b   : > { %2145 = vmatmul.msk.bf16.gmra.mxu2 %vm756_vm2, %v716_v22 }
 0x13c   : > { %v637_v23 = vpop.f32.mrf.mxu1 }
 0x13d   : > { %v638_v24 = vadd.f32 %v637_v23, %v2655_v9  ;;  %v2180_v23 = vor.u32 %v2353_v20, %v2179_v19 }
 0x13f   : > { %v703_v27 = vmax.f32 %v638_v24, 0.0  ;;  %v2181_v24 = vld [vmem:[%s3023_s4 + $0x38] sm:$0xf0]  ;;  %993 = vmatpush.bf16.msrb.mxu3 %v2180_v23 }
 0x144   : > { %v639_v25 = vpop.f32.mrf.mxu1 }
 0x145   : > { %v640_v26 = vadd.f32 %v639_v25, %v2655_v9  ;;  %v2184_v25 = vor.u32 %v2352_v21, %v2181_v24 }
 0x147   : > { %v704_v28 = vmax.f32 %v640_v26, 0.0  ;;  %1042 = vmatpush.bf16.msrb.mxu0 %v2184_v25  ;;  %v2171_v26 = vld [vmem:[%s3023_s4 + $0x20] sm:$0xf]  ;;  %v2365_v25 = vld [vmem:[#allocation2 + $0x18] sm:$0xff] }
 0x149   : > { %v717_v29 = vpack.c.bf16 %v704_v28, %v703_v27  ;;  %v2351_v27 = vld [vmem:[%s3023_s4 + $0x24] sm:$0xf0] }
 0x14a   : > { %v2172_v28 = vor.u32 %v2351_v27, %v2171_v26 }
 0x14b   : > { %2146 = vmatmul.msk.bf16.gmra.mxu2 %vm756_vm2, %v717_v29  ;;  %v2350_v29 = vld [vmem:[%s3023_s4 + $0x24] sm:$0xf] }
 0x14c   : > { %v642_v30 = vpop.f32.mrf.mxu1  ;;  %994 = vmatpush.bf16.msrb.mxu3 %v2172_v28 }
 0x14d   : > { %v643_v31 = vadd.f32 %v642_v30, %v2655_v9  ;;  %v2173_v30 = vld [vmem:[%s3023_s4 + $0x28] sm:$0xf0] }
 0x14f   : > { %v705_v34 = vmax.f32 %v643_v31, 0.0  ;;  %v2176_v31 = vor.u32 %v2350_v29, %v2173_v30 }
 0x151   : > { %1043 = vmatpush.bf16.msrb.mxu0 %v2176_v31  ;;  %v2372_v31 = vld [vmem:[#allocation2 + $0x50] sm:$0xff] }
 0x154   : > { %v644_v32 = vpop.f32.mrf.mxu1 }
 0x155   : > { %v645_v33 = vadd.f32 %v644_v32, %v2655_v9 }
 0x157   : > { %v706_v35 = vmax.f32 %v645_v33, 0.0  ;;  %v2163_v33 = vld [vmem:[%s3023_s4 + $0x10] sm:$0xf] }
 0x159   : > { %v718_v36 = vpack.c.bf16 %v706_v35, %v705_v34  ;;  %v2349_v34 = vld [vmem:[%s3023_s4 + $0x14] sm:$0xf0]  ;;  %v2348_v35 = vld [vmem:[%s3023_s4 + $0x14] sm:$0xf] }
 0x15b   : > { %2147 = vmatmul.msk.bf16.gmra.mxu2 %vm756_vm2, %v718_v36 }
 0x15c   : > { %v647_v37 = vpop.f32.mrf.mxu1 }
 0x15d   : > { %v648_v38 = vadd.f32 %v647_v37, %v2655_v9  ;;  %v2164_v37 = vor.u32 %v2349_v34, %v2163_v33  ;;  %v2364_v34 = vld [vmem:[#allocation2 + $0x10] sm:$0xff] }
 0x15f   : > { %v707_v41 = vmax.f32 %v648_v38, 0.0  ;;  %v2165_v38 = vld [vmem:[%s3023_s4 + $0x18] sm:$0xf0]  ;;  %995 = vmatpush.bf16.msrb.mxu3 %v2164_v37 }
 0x164   : > { %v649_v39 = vpop.f32.mrf.mxu1 }
 0x165   : > { %v650_v40 = vadd.f32 %v649_v39, %v2655_v9 }
 0x167   : > { %v708_v42 = vmax.f32 %v650_v40, 0.0  ;;  %v2168_v40 = vor.u32 %v2348_v35, %v2165_v38 }
 0x169   : > { %v719_v43 = vpack.c.bf16 %v708_v42, %v707_v41  ;;  %1044 = vmatpush.bf16.msrb.mxu0 %v2168_v40  ;;  %v2371_v40 = vld [vmem:[#allocation2 + $0x48] sm:$0xff] }
 0x16b   : > { %2148 = vmatmul.msk.bf16.gmra.mxu2 %vm756_vm2, %v719_v43  ;;  %v2155_v43 = vld [vmem:[%s3023_s4] sm:$0xf] }
 0x16c   : > { %v652_v44 = vpop.f32.mrf.mxu1 }
 0x16d   : > { %v653_v45 = vadd.f32 %v652_v44, %v2655_v9  ;;  %v2347_v44 = vld [vmem:[%s3023_s4 + $0x4] sm:$0xf0] }
 0x16f   : > { %v709_v48 = vmax.f32 %v653_v45, 0.0  ;;  %v2156_v45 = vor.u32 %v2347_v44, %v2155_v43 }
 0x171   : > { %996 = vmatpush.bf16.msrb.mxu3 %v2156_v45 }
 0x174   : > { %v654_v46 = vpop.f32.mrf.mxu1 }
 0x175   : > { %v655_v47 = vadd.f32 %v654_v46, %v2655_v9  ;;  %v2346_v46 = vld [vmem:[%s3023_s4 + $0x4] sm:$0xf] }
 0x177   : > { %v710_v49 = vmax.f32 %v655_v47, 0.0 }
 0x179   : > { %v720_v50 = vpack.c.bf16 %v710_v49, %v709_v48  ;;  %v2377_v49 = vld [vmem:[#allocation2 + $0x78] sm:$0xff] }
 0x17a   : > { %1361 = vmatpush.bf16.msra.mxu2 %v2377_v49  ;;  %v2370_v49 = vld [vmem:[#allocation2 + $0x40] sm:$0xff] }
 0x17b   : > { %2149 = vmatmul.msk.bf16.gmra.mxu2 %vm756_vm2, %v720_v50 }
 0x17c   : > { %v657_v54 = vpop.f32.mrf.mxu1 }
 0x17d   : > { %v658_v5 = vadd.f32 %v657_v54, %v2655_v9 }
 0x17e   : > { %1362 = vmatpush.bf16.msra.mxu2 %v2376_v58 }
 0x17f   : > { %v711_v12 = vmax.f32 %v658_v5, 0.0 }
 0x182   : > { %1363 = vmatpush.bf16.msra.mxu2 %v2375_v3 }
 0x184   : > { %v659_v10 = vpop.f32.mrf.mxu1 }
 0x185   : > { %v660_v14 = vadd.f32 %v659_v10, %v2655_v9 }
 0x187   : > { %v712_v16 = vmax.f32 %v660_v14, 0.0  ;;  %v2374_v14 = vld [vmem:[#allocation2 + $0x60] sm:$0xff] }
 0x188   : > { %1364 = vmatpush.bf16.msra.mxu2 %v2374_v14 }
 0x189   : > { %v721_v18 = vpack.c.bf16 %v712_v16, %v711_v12  ;;  %v2366_v16 = vld [vmem:[#allocation2 + $0x20] sm:$0xff] }
 0x18a   : > { %1315 = vmatpush.bf16.msra.mxu1 %v2366_v16 }
 0x18b   : > { %2150 = vmatmul.msk.bf16.gmra.mxu2 %vm756_vm2, %v721_v18 }
 0x18c   : > { %v662_v22 = vpop.f32.mrf.mxu1 }
 0x18d   : > { %v663_v32 = vadd.f32 %v662_v22, %v2655_v9  ;;  %v2373_v22 = vld [vmem:[#allocation2 + $0x58] sm:$0xff] }
 0x18e   : > { %1365 = vmatpush.bf16.msra.mxu2 %v2373_v22  ;;  %1316 = vmatpush.bf16.msra.mxu1 %v2365_v25 }
 0x18f   : > { %v713_v41 = vmax.f32 %v663_v32, 0.0 }
 0x192   : > { %1366 = vmatpush.bf16.msra.mxu2 %v2372_v31  ;;  %1317 = vmatpush.bf16.msra.mxu1 %v2364_v34 }
 0x194   : > { %v664_v36 = vpop.f32.mrf.mxu1 }
 0x195   : > { %v665_v39 = vadd.f32 %v664_v36, %v2655_v9  ;;  %v2157_v9 = vld [vmem:[%s3023_s4 + $0x8] sm:$0xf0] }
 0x196   : > { %v2160_v48 = vor.u32 %v2346_v46, %v2157_v9  ;;  %1367 = vmatpush.bf16.msra.mxu2 %v2371_v40 }
 0x197   : > { %v714_v42 = vmax.f32 %v665_v39, 0.0 }
 0x198   : > { %1045 = vmatpush.bf16.msrb.mxu0 %v2160_v48 }
 0x199   : > { %v722_v47 = vpack.c.bf16 %v714_v42, %v713_v41  ;;  %v2363_v42 = vld [vmem:[#allocation2 + $0x8] sm:$0xff] }
 0x19a   : > { %1318 = vmatpush.bf16.msra.mxu1 %v2363_v42  ;;  %1368 = vmatpush.bf16.msra.mxu2 %v2370_v49 }
 0x19b   : > { %2151 = vmatmul.msk.bf16.gmra.mxu2 %vm756_vm2, %v722_v47 }
 0x1ae   : > { %v790_v50 = vpop.f32.mrf.mxu2 }
 0x1af   : > { %v791_v53 = vadd.f32 %v790_v50, %v2780_v52  ;;  %v2362_v50 = vld [vmem:[#allocation2] sm:$0xff] }
 0x1b0   : > { %1319 = vmatpush.bf16.msra.mxu1 %v2362_v50 }
 0x1b1   : > { %v862_v56 = vmax.f32 %v791_v53, 0.0 }
 0x1b6   : > { %v792_v54 = vpop.f32.mrf.mxu2 }
 0x1b7   : > { %v793_v55 = vadd.f32 %v792_v54, %v2780_v52 }
 0x1b9   : > { %v863_v57 = vmax.f32 %v793_v55, 0.0 }
 0x1bb   : > { %v878_v59 = vpack.c.bf16 %v863_v57, %v862_v56 }
 0x1bd   : > { %997 = vmatmul.bf16.vlgmr.msrb.gmra.mxu3 %v878_v59  ;;  %1046 = vmatmul.bf16.vlgmr.msrb.gmra.mxu0 %v878_v59  ;;  %v2152_v59 = vld [vmem:[%s3028_s9 + $0x3] ss:$8 sm:$0x3] }
 0x1be   : > { %v795_v60 = vpop.f32.mrf.mxu2  ;;  %v2801_v61 = vperm.slane %v2152_v59, 1 }
 0x1bf   : > { %v796_v62 = vadd.f32 %v795_v60, %v2780_v52 }
 0x1c1   : > { %v864_v1 = vmax.f32 %v796_v62, 0.0  ;;  %v2385_v62 = vld [vmem:[%s3025_s6 + $0x38] sm:$0xff] }
 0x1c2   : > { %1531 = vmatpush.bf16.msra.mxu3 %v2385_v62 }
 0x1c6   : > { %v797_v63 = vpop.f32.mrf.mxu2 }
 0x1c7   : > { %v798_v0 = vadd.f32 %v797_v63, %v2780_v52 }
 0x1c9   : > { %v865_v2 = vmax.f32 %v798_v0, 0.0 }
 0x1cb   : > { %v879_v4 = vpack.c.bf16 %v865_v2, %v864_v1  ;;  %v2807_v1 = vperm.slane %v2152_v59, 0  ;;  %v2381_v59 = vld [vmem:[%s3025_s6 + $0x18] sm:$0xff] }
 0x1cd   : > { %1002 = vmatmul.bf16.gmra.mxu3 %v879_v4  ;;  %1051 = vmatmul.bf16.gmra.mxu0 %v879_v4 }
 0x1ce   : > { %v800_v5 = vpop.f32.mrf.mxu2 }
 0x1cf   : > { %v801_v7 = vadd.f32 %v800_v5, %v2780_v52 }
 0x1d1   : > { %v866_v11 = vmax.f32 %v801_v7, 0.0 }
 0x1d6   : > { %v802_v8 = vpop.f32.mrf.mxu2 }
 0x1d7   : > { %v803_v10 = vadd.f32 %v802_v8, %v2780_v52 }
 0x1d9   : > { %v867_v13 = vmax.f32 %v803_v10, 0.0 }
 0x1db   : > { %v880_v15 = vpack.c.bf16 %v867_v13, %v866_v11 }
 0x1dd   : > { %1007 = vmatmul.bf16.gmra.mxu3 %v880_v15  ;;  %1056 = vmatmul.bf16.gmra.mxu0 %v880_v15  ;;  %v2384_v15 = vld [vmem:[%s3025_s6 + $0x30] sm:$0xff] }
 0x1de   : > { %v805_v12 = vpop.f32.mrf.mxu2  ;;  %1532 = vmatpush.bf16.msra.mxu3 %v2384_v15 }
 0x1df   : > { %v806_v17 = vadd.f32 %v805_v12, %v2780_v52 }
 0x1e1   : > { %v868_v20 = vmax.f32 %v806_v17, 0.0 }
 0x1e6   : > { %v807_v18 = vpop.f32.mrf.mxu2 }
 0x1e7   : > { %v808_v19 = vadd.f32 %v807_v18, %v2780_v52 }
 0x1e9   : > { %v869_v21 = vmax.f32 %v808_v19, 0.0 }
 0x1eb   : > { %v881_v23 = vpack.c.bf16 %v869_v21, %v868_v20 }
 0x1ed   : > { %1012 = vmatmul.bf16.gmra.mxu3 %v881_v23  ;;  %1061 = vmatmul.bf16.gmra.mxu0 %v881_v23 }
 0x1ee   : > { %v810_v24 = vpop.f32.mrf.mxu2 }
 0x1ef   : > { %v811_v26 = vadd.f32 %v810_v24, %v2780_v52 }
 0x1f1   : > { %v870_v29 = vmax.f32 %v811_v26, 0.0 }
 0x1f6   : > { %v812_v27 = vpop.f32.mrf.mxu2 }
 0x1f7   : > { %v813_v28 = vadd.f32 %v812_v27, %v2780_v52 }
 0x1f9   : > { %v871_v30 = vmax.f32 %v813_v28, 0.0 }
 0x1fb   : > { %v882_v32 = vpack.c.bf16 %v871_v30, %v870_v29  ;;  %v2383_v29 = vld [vmem:[%s3025_s6 + $0x28] sm:$0xff] }
 0x1fc   : > { %1533 = vmatpush.bf16.msra.mxu3 %v2383_v29 }
 0x1fd   : > { %1017 = vmatmul.bf16.gmra.mxu3 %v882_v32  ;;  %1066 = vmatmul.bf16.gmra.mxu0 %v882_v32 }
 0x1fe   : > { %v815_v33 = vpop.f32.mrf.mxu2 }
 0x1ff   : > { %v816_v35 = vadd.f32 %v815_v33, %v2780_v52 }
 0x201   : > { %v872_v38 = vmax.f32 %v816_v35, 0.0 }
 0x206   : > { %v817_v36 = vpop.f32.mrf.mxu2 }
 0x207   : > { %v818_v37 = vadd.f32 %v817_v36, %v2780_v52 }
 0x209   : > { %v873_v39 = vmax.f32 %v818_v37, 0.0 }
 0x20b   : > { %v883_v41 = vpack.c.bf16 %v873_v39, %v872_v38 }
 0x20d   : > { %1022 = vmatmul.bf16.gmra.mxu3 %v883_v41  ;;  %1071 = vmatmul.bf16.gmra.mxu0 %v883_v41 }
 0x20e   : > { %v820_v43 = vpop.f32.mrf.mxu2 }
 0x20f   : > { %v821_v44 = vadd.f32 %v820_v43, %v2780_v52 }
 0x211   : > { %v874_v9 = vmax.f32 %v821_v44, 0.0  ;;  %v2382_v44 = vld [vmem:[%s3025_s6 + $0x20] sm:$0xff] }
 0x212   : > { %1534 = vmatpush.bf16.msra.mxu3 %v2382_v44  ;;  %v2378_v44 = vld [vmem:[%s3025_s6] sm:$0xff] }
 0x216   : > { %v822_v45 = vpop.f32.mrf.mxu2  ;;  %1535 = vmatpush.bf16.msra.mxu3 %v2381_v59  ;;  %v2387_v59 = vld [vmem:[%s3026_s7 + $0x8] sm:$0xff] }
 0x217   : > { %v823_v46 = vadd.f32 %v822_v45, %v2780_v52  ;;  %1683 = vmatpush.bf16.msra.mxu0 %v2387_v59 }
 0x219   : > { %v875_v47 = vmax.f32 %v823_v46, 0.0 }
 0x21b   : > { %v884_v48 = vpack.c.bf16 %v875_v47, %v874_v9 }
 0x21d   : > { %1027 = vmatmul.bf16.gmra.mxu3 %v884_v48  ;;  %1076 = vmatmul.bf16.gmra.mxu0 %v884_v48 }
 0x21e   : > { %v825_v51 = vpop.f32.mrf.mxu2 }
 0x21f   : > { %v826_v53 = vadd.f32 %v825_v51, %v2780_v52 }
 0x221   : > { %v876_v56 = vmax.f32 %v826_v53, 0.0 }
 0x226   : > { %v827_v54 = vpop.f32.mrf.mxu2 }
 0x227   : > { %v828_v55 = vadd.f32 %v827_v54, %v2780_v52 }
 0x229   : > { %v877_v57 = vmax.f32 %v828_v55, 0.0 }
 0x22b   : > { %v885_v58 = vpack.c.bf16 %v877_v57, %v876_v56 }
 0x22d   : > { %1032 = vmatmul.bf16.gmra.mxu3 %v885_v58  ;;  %1081 = vmatmul.bf16.gmra.mxu0 %v885_v58 }
 0x23a   : > { %v1047_v60 = vpop.f32.mrf.mxu0 }
 0x23b   : > { %v1048_v52 = vadd.f32 %v1047_v60, %v2801_v61 }
 0x23d   : > { %v1136_v3 = vmax.f32 %v1048_v52, 0.0 }
 0x240   : > { %v998_v63 = vpop.f32.mrf.mxu3 }
 0x241   : > { %v999_v5 = vadd.f32 %v998_v63, %v2807_v1 }
 0x242   : > { %v1049_v0 = vpop.f32.mrf.mxu0 }
 0x243   : > { %v1050_v2 = vadd.f32 %v1049_v0, %v2801_v61  ;;  %v1135_v11 = vmax.f32 %v999_v5, 0.0 }
 0x245   : > { %v1138_v4 = vmax.f32 %v1050_v2, 0.0 }
 0x247   : > { %v1168_v6 = vpack.c.bf16 %v1138_v4, %v1136_v3 }
 0x248   : > { %v1000_v7 = vpop.f32.mrf.mxu3 }
 0x249   : > { %v1001_v8 = vadd.f32 %v1000_v7, %v2807_v1  ;;  %1369 = vmatmul.bf16.vlgmr.msra.gmra.mxu2 %v1168_v6 }
 0x24a   : > { %v1052_v10 = vpop.f32.mrf.mxu0 }
 0x24b   : > { %v1137_v13 = vmax.f32 %v1001_v8, 0.0  ;;  %v1053_v16 = vadd.f32 %v1052_v10, %v2801_v61 }
 0x24d   : > { %v1167_v14 = vpack.c.bf16 %v1137_v13, %v1135_v11  ;;  %v1140_v19 = vmax.f32 %v1053_v16, 0.0  ;;  %v2380_v13 = vld [vmem:[%s3025_s6 + $0x10] sm:$0xff] }
 0x24e   : > { %1536 = vmatpush.bf16.msra.mxu3 %v2380_v13 }
 0x24f   : > { %1320 = vmatmul.bf16.vlgmr.msra.gmra.mxu1 %v1167_v14 }
 0x250   : > { %v1003_v12 = vpop.f32.mrf.mxu3 }
 0x251   : > { %v1004_v21 = vadd.f32 %v1003_v12, %v2807_v1 }
 0x252   : > { %v1054_v17 = vpop.f32.mrf.mxu0 }
 0x253   : > { %v1055_v18 = vadd.f32 %v1054_v17, %v2801_v61  ;;  %v1139_v26 = vmax.f32 %v1004_v21, 0.0 }
 0x255   : > { %v1142_v20 = vmax.f32 %v1055_v18, 0.0 }
 0x257   : > { %v1170_v22 = vpack.c.bf16 %v1142_v20, %v1140_v19 }
 0x258   : > { %v1005_v23 = vpop.f32.mrf.mxu3 }
 0x259   : > { %v1006_v24 = vadd.f32 %v1005_v23, %v2807_v1  ;;  %1374 = vmatmul.bf16.gmra.mxu2 %v1170_v22 }
 0x25a   : > { %v1057_v25 = vpop.f32.mrf.mxu0 }
 0x25b   : > { %v1141_v27 = vmax.f32 %v1006_v24, 0.0  ;;  %v1058_v31 = vadd.f32 %v1057_v25, %v2801_v61 }
 0x25d   : > { %v1169_v28 = vpack.c.bf16 %v1141_v27, %v1139_v26  ;;  %v1144_v34 = vmax.f32 %v1058_v31, 0.0  ;;  %v2379_v27 = vld [vmem:[%s3025_s6 + $0x8] sm:$0xff] }
 0x25e   : > { %1537 = vmatpush.bf16.msra.mxu3 %v2379_v27 }
 0x25f   : > { %1325 = vmatmul.bf16.gmra.mxu1 %v1169_v28 }
 0x260   : > { %v1008_v30 = vpop.f32.mrf.mxu3 }
 0x261   : > { %v1009_v36 = vadd.f32 %v1008_v30, %v2807_v1 }
 0x262   : > { %v1059_v32 = vpop.f32.mrf.mxu0  ;;  %1538 = vmatpush.bf16.msra.mxu3 %v2378_v44 }
 0x263   : > { %v1060_v33 = vadd.f32 %v1059_v32, %v2801_v61  ;;  %v1143_v41 = vmax.f32 %v1009_v36, 0.0 }
 0x265   : > { %v1146_v35 = vmax.f32 %v1060_v33, 0.0 }
 0x267   : > { %v1172_v37 = vpack.c.bf16 %v1146_v35, %v1144_v34 }
 0x268   : > { %v1010_v38 = vpop.f32.mrf.mxu3 }
 0x269   : > { %v1011_v39 = vadd.f32 %v1010_v38, %v2807_v1  ;;  %1379 = vmatmul.bf16.gmra.mxu2 %v1172_v37 }
 0x26a   : > { %v1062_v40 = vpop.f32.mrf.mxu0 }
 0x26b   : > { %v1145_v42 = vmax.f32 %v1011_v39, 0.0  ;;  %v1063_v46 = vadd.f32 %v1062_v40, %v2801_v61 }
 0x26d   : > { %v1171_v43 = vpack.c.bf16 %v1145_v42, %v1143_v41  ;;  %v1148_v48 = vmax.f32 %v1063_v46, 0.0 }
 0x26f   : > { %1330 = vmatmul.bf16.gmra.mxu1 %v1171_v43 }
 0x270   : > { %v1013_v45 = vpop.f32.mrf.mxu3 }
 0x271   : > { %v1014_v50 = vadd.f32 %v1013_v45, %v2807_v1 }
 0x272   : > { %v1064_v9 = vpop.f32.mrf.mxu0 }
 0x273   : > { %v1065_v47 = vadd.f32 %v1064_v9, %v2801_v61  ;;  %v1147_v56 = vmax.f32 %v1014_v50, 0.0 }
 0x275   : > { %v1150_v49 = vmax.f32 %v1065_v47, 0.0 }
 0x277   : > { %v1174_v51 = vpack.c.bf16 %v1150_v49, %v1148_v48 }
 0x278   : > { %v1015_v53 = vpop.f32.mrf.mxu3 }
 0x279   : > { %v1016_v54 = vadd.f32 %v1015_v53, %v2807_v1  ;;  %1384 = vmatmul.bf16.gmra.mxu2 %v1174_v51 }
 0x27a   : > { %v1067_v55 = vpop.f32.mrf.mxu0 }
 0x27b   : > { %v1149_v57 = vmax.f32 %v1016_v54, 0.0  ;;  %v1068_v62 = vadd.f32 %v1067_v55, %v2801_v61 }
 0x27d   : > { %v1173_v58 = vpack.c.bf16 %v1149_v57, %v1147_v56  ;;  %v1152_v0 = vmax.f32 %v1068_v62, 0.0 }
 0x27f   : > { %1335 = vmatmul.bf16.gmra.mxu1 %v1173_v58 }
 0x280   : > { %v1018_v60 = vpop.f32.mrf.mxu3 }
 0x281   : > { %v1019_v3 = vadd.f32 %v1018_v60, %v2807_v1 }
 0x282   : > { %v1069_v63 = vpop.f32.mrf.mxu0 }
 0x283   : > { %v1070_v52 = vadd.f32 %v1069_v63, %v2801_v61  ;;  %v1151_v8 = vmax.f32 %v1019_v3, 0.0 }
 0x285   : > { %v1154_v2 = vmax.f32 %v1070_v52, 0.0 }
 0x287   : > { %v1176_v4 = vpack.c.bf16 %v1154_v2, %v1152_v0 }
 0x288   : > { %v1020_v5 = vpop.f32.mrf.mxu3 }
 0x289   : > { %v1021_v6 = vadd.f32 %v1020_v5, %v2807_v1  ;;  %1389 = vmatmul.bf16.gmra.mxu2 %v1176_v4 }
 0x28a   : > { %v1072_v7 = vpop.f32.mrf.mxu0 }
 0x28b   : > { %v1153_v10 = vmax.f32 %v1021_v6, 0.0  ;;  %v1073_v15 = vadd.f32 %v1072_v7, %v2801_v61 }
 0x28d   : > { %v1175_v11 = vpack.c.bf16 %v1153_v10, %v1151_v8  ;;  %v1156_v17 = vmax.f32 %v1073_v15, 0.0 }
 0x28f   : > { %1340 = vmatmul.bf16.gmra.mxu1 %v1175_v11 }
 0x290   : > { %v1023_v14 = vpop.f32.mrf.mxu3 }
 0x291   : > { %v1024_v19 = vadd.f32 %v1023_v14, %v2807_v1 }
 0x292   : > { %v1074_v12 = vpop.f32.mrf.mxu0 }
 0x293   : > { %v1075_v16 = vadd.f32 %v1074_v12, %v2801_v61  ;;  %v1155_v24 = vmax.f32 %v1024_v19, 0.0 }
 0x295   : > { %v1158_v18 = vmax.f32 %v1075_v16, 0.0 }
 0x297   : > { %v1178_v20 = vpack.c.bf16 %v1158_v18, %v1156_v17 }
 0x298   : > { %v1025_v21 = vpop.f32.mrf.mxu3 }
 0x299   : > { %v1026_v22 = vadd.f32 %v1025_v21, %v2807_v1  ;;  %1394 = vmatmul.bf16.gmra.mxu2 %v1178_v20 }
 0x29a   : > { %v1077_v23 = vpop.f32.mrf.mxu0 }
 0x29b   : > { %v1157_v25 = vmax.f32 %v1026_v22, 0.0  ;;  %v1078_v29 = vadd.f32 %v1077_v23, %v2801_v61 }
 0x29d   : > { %v1177_v26 = vpack.c.bf16 %v1157_v25, %v1155_v24  ;;  %v1160_v32 = vmax.f32 %v1078_v29, 0.0 }
 0x29f   : > { %1345 = vmatmul.bf16.gmra.mxu1 %v1177_v26 }
 0x2a0   : > { %v1028_v28 = vpop.f32.mrf.mxu3 }
 0x2a1   : > { %v1029_v34 = vadd.f32 %v1028_v28, %v2807_v1 }
 0x2a2   : > { %v1079_v30 = vpop.f32.mrf.mxu0 }
 0x2a3   : > { %v1080_v31 = vadd.f32 %v1079_v30, %v2801_v61  ;;  %v1159_v39 = vmax.f32 %v1029_v34, 0.0 }
 0x2a5   : > { %v1162_v33 = vmax.f32 %v1080_v31, 0.0 }
 0x2a7   : > { %v1180_v35 = vpack.c.bf16 %v1162_v33, %v1160_v32 }
 0x2a8   : > { %v1030_v36 = vpop.f32.mrf.mxu3 }
 0x2a9   : > { %v1031_v37 = vadd.f32 %v1030_v36, %v2807_v1  ;;  %1399 = vmatmul.bf16.gmra.mxu2 %v1180_v35 }
 0x2aa   : > { %v1082_v38 = vpop.f32.mrf.mxu0 }
 0x2ab   : > { %v1161_v40 = vmax.f32 %v1031_v37, 0.0  ;;  %v1083_v43 = vadd.f32 %v1082_v38, %v2801_v61 }
 0x2ad   : > { %v1179_v41 = vpack.c.bf16 %v1161_v40, %v1159_v39  ;;  %v1164_v9 = vmax.f32 %v1083_v43, 0.0 }
 0x2af   : > { %1350 = vmatmul.bf16.gmra.mxu1 %v1179_v41  ;;  %v2386_v41 = vld [vmem:[%s3026_s7] sm:$0xff] }
 0x2b0   : > { %v1033_v42 = vpop.f32.mrf.mxu3  ;;  %1684 = vmatpush.bf16.msra.mxu0 %v2386_v41 }
 0x2b1   : > { %v1034_v48 = vadd.f32 %v1033_v42, %v2807_v1 }
 0x2b2   : > { %v1084_v45 = vpop.f32.mrf.mxu0 }
 0x2b3   : > { %v1085_v46 = vadd.f32 %v1084_v45, %v2801_v61  ;;  %v1163_v53 = vmax.f32 %v1034_v48, 0.0  ;;  %v2864_v61 = vld [vmem:[%s3028_s9 + $0x4] ss:$0 sm:$0xff] }
 0x2b5   : > { %v1166_v47 = vmax.f32 %v1085_v46, 0.0 }
 0x2b7   : > { %v1182_v49 = vpack.c.bf16 %v1166_v47, %v1164_v9 }
 0x2b8   : > { %v1035_v50 = vpop.f32.mrf.mxu3 }
 0x2b9   : > { %v1036_v51 = vadd.f32 %v1035_v50, %v2807_v1  ;;  %1404 = vmatmul.bf16.gmra.mxu2 %v1182_v49 }
 0x2bb   : > { %v1165_v54 = vmax.f32 %v1036_v51, 0.0 }
 0x2bd   : > { %v1181_v55 = vpack.c.bf16 %v1165_v54, %v1163_v53 }
 0x2bf   : > { %1355 = vmatmul.bf16.gmra.mxu1 %v1181_v55 }
 0x2cc   : > { %v1321_v56 = vpop.f32.mrf.mxu1  ;;  %v1370_v57 = vpop.f32.mrf.mxu2 }
 0x2cd   : > { %v1322_v58 = vadd.f32 %v1321_v56, %v2864_v61 }
 0x2cf   : > { %v1371_v62 = vadd.f32 %v1370_v57, %v1322_v58 }
 0x2d1   : > { %v1442_v0 = vmax.f32 %v1371_v62, 0.0 }
 0x2d4   : > { %v1323_v1 = vpop.f32.mrf.mxu1  ;;  %v1372_v60 = vpop.f32.mrf.mxu2 }
 0x2d5   : > { %v1324_v63 = vadd.f32 %v1323_v1, %v2864_v61 }
 0x2d7   : > { %v1373_v52 = vadd.f32 %v1372_v60, %v1324_v63 }
 0x2d9   : > { %v1443_v2 = vmax.f32 %v1373_v52, 0.0 }
 0x2db   : > { %v1458_v3 = vpack.c.bf16 %v1443_v2, %v1442_v0 }
 0x2dc   : > { %v1326_v4 = vpop.f32.mrf.mxu1  ;;  %v1375_v5 = vpop.f32.mrf.mxu2 }
 0x2dd   : > { %1539 = vmatmul.bf16.vlgmr.msra.gmra.mxu3 %v1458_v3  ;;  %v1327_v6 = vadd.f32 %v1326_v4, %v2864_v61 }
 0x2df   : > { %v1376_v10 = vadd.f32 %v1375_v5, %v1327_v6 }
 0x2e1   : > { %v1444_v14 = vmax.f32 %v1376_v10, 0.0 }
 0x2e4   : > { %v1328_v7 = vpop.f32.mrf.mxu1  ;;  %v1377_v8 = vpop.f32.mrf.mxu2 }
 0x2e5   : > { %v1329_v11 = vadd.f32 %v1328_v7, %v2864_v61 }
 0x2e7   : > { %v1378_v13 = vadd.f32 %v1377_v8, %v1329_v11 }
 0x2e9   : > { %v1445_v15 = vmax.f32 %v1378_v13, 0.0 }
 0x2eb   : > { %v1459_v12 = vpack.c.bf16 %v1445_v15, %v1444_v14 }
 0x2ec   : > { %v1331_v16 = vpop.f32.mrf.mxu1  ;;  %v1380_v17 = vpop.f32.mrf.mxu2 }
 0x2ed   : > { %1544 = vmatmul.bf16.gmra.mxu3 %v1459_v12  ;;  %v1332_v18 = vadd.f32 %v1331_v16, %v2864_v61 }
 0x2ef   : > { %v1381_v21 = vadd.f32 %v1380_v17, %v1332_v18 }
 0x2f1   : > { %v1446_v24 = vmax.f32 %v1381_v21, 0.0  ;;  %v1482_v21 = vld [vmem:[%s3028_s9 + $0x5] ss:$0 sm:$0xff] }
 0x2f4   : > { %v1333_v19 = vpop.f32.mrf.mxu1  ;;  %v1382_v20 = vpop.f32.mrf.mxu2 }
 0x2f5   : > { %v1334_v22 = vadd.f32 %v1333_v19, %v2864_v61 }
 0x2f7   : > { %v1383_v23 = vadd.f32 %v1382_v20, %v1334_v22 }
 0x2f9   : > { %v1447_v25 = vmax.f32 %v1383_v23, 0.0 }
 0x2fb   : > { %v1460_v26 = vpack.c.bf16 %v1447_v25, %v1446_v24 }
 0x2fc   : > { %v1336_v27 = vpop.f32.mrf.mxu1  ;;  %v1385_v28 = vpop.f32.mrf.mxu2 }
 0x2fd   : > { %1549 = vmatmul.bf16.gmra.mxu3 %v1460_v26  ;;  %v1337_v29 = vadd.f32 %v1336_v27, %v2864_v61 }
 0x2ff   : > { %v1386_v32 = vadd.f32 %v1385_v28, %v1337_v29 }
 0x301   : > { %v1448_v35 = vmax.f32 %v1386_v32, 0.0 }
 0x304   : > { %v1338_v30 = vpop.f32.mrf.mxu1  ;;  %v1387_v31 = vpop.f32.mrf.mxu2 }
 0x305   : > { %v1339_v33 = vadd.f32 %v1338_v30, %v2864_v61 }
 0x307   : > { %v1388_v34 = vadd.f32 %v1387_v31, %v1339_v33 }
 0x309   : > { %v1449_v36 = vmax.f32 %v1388_v34, 0.0 }
 0x30b   : > { %v1461_v37 = vpack.c.bf16 %v1449_v36, %v1448_v35 }
 0x30c   : > { %v1341_v38 = vpop.f32.mrf.mxu1  ;;  %v1390_v39 = vpop.f32.mrf.mxu2 }
 0x30d   : > { %1554 = vmatmul.bf16.gmra.mxu3 %v1461_v37  ;;  %v1342_v40 = vadd.f32 %v1341_v38, %v2864_v61 }
 0x30f   : > { %v1391_v44 = vadd.f32 %v1390_v39, %v1342_v40 }
 0x311   : > { %v1450_v9 = vmax.f32 %v1391_v44, 0.0 }
 0x314   : > { %v1343_v42 = vpop.f32.mrf.mxu1  ;;  %v1392_v43 = vpop.f32.mrf.mxu2 }
 0x315   : > { %v1344_v45 = vadd.f32 %v1343_v42, %v2864_v61 }
 0x317   : > { %v1393_v46 = vadd.f32 %v1392_v43, %v1344_v45 }
 0x319   : > { %v1451_v47 = vmax.f32 %v1393_v46, 0.0 }
 0x31b   : > { %v1462_v48 = vpack.c.bf16 %v1451_v47, %v1450_v9 }
 0x31c   : > { %v1346_v49 = vpop.f32.mrf.mxu1  ;;  %v1395_v50 = vpop.f32.mrf.mxu2 }
 0x31d   : > { %1559 = vmatmul.bf16.gmra.mxu3 %v1462_v48  ;;  %v1347_v51 = vadd.f32 %v1346_v49, %v2864_v61 }
 0x31f   : > { %v1396_v55 = vadd.f32 %v1395_v50, %v1347_v51 }
 0x321   : > { %v1452_v58 = vmax.f32 %v1396_v55, 0.0 }
 0x324   : > { %v1348_v53 = vpop.f32.mrf.mxu1  ;;  %v1397_v54 = vpop.f32.mrf.mxu2 }
 0x325   : > { %v1349_v56 = vadd.f32 %v1348_v53, %v2864_v61 }
 0x327   : > { %v1398_v57 = vadd.f32 %v1397_v54, %v1349_v56 }
 0x329   : > { %v1453_v59 = vmax.f32 %v1398_v57, 0.0 }
 0x32b   : > { %v1463_v1 = vpack.c.bf16 %v1453_v59, %v1452_v58 }
 0x32c   : > { %v1351_v60 = vpop.f32.mrf.mxu1  ;;  %v1400_v62 = vpop.f32.mrf.mxu2 }
 0x32d   : > { %1564 = vmatmul.bf16.gmra.mxu3 %v1463_v1  ;;  %v1352_v63 = vadd.f32 %v1351_v60, %v2864_v61 }
 0x32f   : > { %v1401_v2 = vadd.f32 %v1400_v62, %v1352_v63 }
 0x331   : > { %v1454_v5 = vmax.f32 %v1401_v2, 0.0 }
 0x334   : > { %v1353_v52 = vpop.f32.mrf.mxu1  ;;  %v1402_v0 = vpop.f32.mrf.mxu2 }
 0x335   : > { %v1354_v3 = vadd.f32 %v1353_v52, %v2864_v61 }
 0x337   : > { %v1403_v4 = vadd.f32 %v1402_v0, %v1354_v3 }
 0x339   : > { %v1455_v6 = vmax.f32 %v1403_v4, 0.0 }
 0x33b   : > { %v1464_v7 = vpack.c.bf16 %v1455_v6, %v1454_v5 }
 0x33c   : > { %v1356_v8 = vpop.f32.mrf.mxu1  ;;  %v1405_v10 = vpop.f32.mrf.mxu2 }
 0x33d   : > { %1569 = vmatmul.bf16.gmra.mxu3 %v1464_v7  ;;  %v1357_v11 = vadd.f32 %v1356_v8, %v2864_v61 }
 0x33f   : > { %v1406_v14 = vadd.f32 %v1405_v10, %v1357_v11 }
 0x341   : > { %v1456_v17 = vmax.f32 %v1406_v14, 0.0  ;;  %v2902_v14 = vld [vmem:[%s3028_s9 + $0x6] ss:$0 sm:$0xff] }
 0x344   : > { %v1358_v13 = vpop.f32.mrf.mxu1  ;;  %v1407_v12 = vpop.f32.mrf.mxu2 }
 0x345   : > { %v1359_v15 = vadd.f32 %v1358_v13, %v2864_v61 }
 0x347   : > { %v1408_v16 = vadd.f32 %v1407_v12, %v1359_v15 }
 0x349   : > { %v1457_v18 = vmax.f32 %v1408_v16, 0.0  ;;  %v2908_v16 = vld [vmem:[%s3027_s8] ss:$0 sm:$0xff] }
 0x34b   : > { %v1465_v19 = vpack.c.bf16 %v1457_v18, %v1456_v17 }
 0x34d   : > { %1574 = vmatmul.bf16.gmra.mxu3 %v1465_v19 }
 0x360   : > { %v1540_v20 = vpop.f32.mrf.mxu3 }
 0x361   : > { %v1541_v22 = vadd.f32 %v1540_v20, %v1482_v21 }
 0x363   : > { %v1612_v25 = vmax.f32 %v1541_v22, 0.0 }
 0x368   : > { %v1542_v23 = vpop.f32.mrf.mxu3 }
 0x369   : > { %v1543_v24 = vadd.f32 %v1542_v23, %v1482_v21 }
 0x36b   : > { %v1613_v26 = vmax.f32 %v1543_v24, 0.0 }
 0x36d   : > { %v1628_v27 = vpack.c.bf16 %v1613_v26, %v1612_v25 }
 0x36f   : > { %2321 = vmatmul.msk.bf16.vlgmr.msra.gmra.mxu0 %vm593_vm1, %v1628_v27 }
 0x370   : > { %v1545_v61 = vpop.f32.mrf.mxu3 }
 0x371   : > { %v1546_v28 = vadd.f32 %v1545_v61, %v1482_v21 }
 0x373   : > { %v1614_v31 = vmax.f32 %v1546_v28, 0.0 }
 0x378   : > { %v1547_v29 = vpop.f32.mrf.mxu3 }
 0x379   : > { %v1548_v30 = vadd.f32 %v1547_v29, %v1482_v21 }
 0x37b   : > { %v1615_v32 = vmax.f32 %v1548_v30, 0.0 }
 0x37d   : > { %v1629_v33 = vpack.c.bf16 %v1615_v32, %v1614_v31 }
 0x37f   : > { %2322 = vmatmul.msk.bf16.gmra.mxu0 %vm593_vm1, %v1629_v33 }
 0x380   : > { %v1550_v34 = vpop.f32.mrf.mxu3 }
 0x381   : > { %v1551_v35 = vadd.f32 %v1550_v34, %v1482_v21 }
 0x383   : > { %v1616_v38 = vmax.f32 %v1551_v35, 0.0 }
 0x388   : > { %v1552_v36 = vpop.f32.mrf.mxu3 }
 0x389   : > { %v1553_v37 = vadd.f32 %v1552_v36, %v1482_v21 }
 0x38b   : > { %v1617_v39 = vmax.f32 %v1553_v37, 0.0 }
 0x38d   : > { %v1630_v40 = vpack.c.bf16 %v1617_v39, %v1616_v38 }
 0x38f   : > { %2323 = vmatmul.msk.bf16.gmra.mxu0 %vm593_vm1, %v1630_v40 }
 0x390   : > { %v1555_v41 = vpop.f32.mrf.mxu3 }
 0x391   : > { %v1556_v42 = vadd.f32 %v1555_v41, %v1482_v21 }
 0x393   : > { %v1618_v45 = vmax.f32 %v1556_v42, 0.0 }
 0x398   : > { %v1557_v43 = vpop.f32.mrf.mxu3 }
 0x399   : > { %v1558_v44 = vadd.f32 %v1557_v43, %v1482_v21 }
 0x39b   : > { %v1619_v46 = vmax.f32 %v1558_v44, 0.0 }
 0x39d   : > { %v1631_v9 = vpack.c.bf16 %v1619_v46, %v1618_v45 }
 0x39f   : > { %2324 = vmatmul.msk.bf16.gmra.mxu0 %vm593_vm1, %v1631_v9 }
 0x3a0   : > { %v1560_v47 = vpop.f32.mrf.mxu3 }
 0x3a1   : > { %v1561_v48 = vadd.f32 %v1560_v47, %v1482_v21 }
 0x3a3   : > { %v1620_v51 = vmax.f32 %v1561_v48, 0.0 }
 0x3a8   : > { %v1562_v49 = vpop.f32.mrf.mxu3 }
 0x3a9   : > { %v1563_v50 = vadd.f32 %v1562_v49, %v1482_v21 }
 0x3ab   : > { %v1621_v53 = vmax.f32 %v1563_v50, 0.0 }
 0x3ad   : > { %v1632_v54 = vpack.c.bf16 %v1621_v53, %v1620_v51 }
 0x3af   : > { %2325 = vmatmul.msk.bf16.gmra.mxu0 %vm593_vm1, %v1632_v54 }
 0x3b0   : > { %v1565_v55 = vpop.f32.mrf.mxu3 }
 0x3b1   : > { %v1566_v56 = vadd.f32 %v1565_v55, %v1482_v21 }
 0x3b3   : > { %v1622_v59 = vmax.f32 %v1566_v56, 0.0 }
 0x3b8   : > { %v1567_v57 = vpop.f32.mrf.mxu3 }
 0x3b9   : > { %v1568_v58 = vadd.f32 %v1567_v57, %v1482_v21 }
 0x3bb   : > { %v1623_v1 = vmax.f32 %v1568_v58, 0.0 }
 0x3bd   : > { %v1633_v60 = vpack.c.bf16 %v1623_v1, %v1622_v59 }
 0x3bf   : > { %2326 = vmatmul.msk.bf16.gmra.mxu0 %vm593_vm1, %v1633_v60 }
 0x3c0   : > { %v1570_v62 = vpop.f32.mrf.mxu3 }
 0x3c1   : > { %v1571_v63 = vadd.f32 %v1570_v62, %v1482_v21 }
 0x3c3   : > { %v1624_v2 = vmax.f32 %v1571_v63, 0.0 }
 0x3c8   : > { %v1572_v52 = vpop.f32.mrf.mxu3 }
 0x3c9   : > { %v1573_v0 = vadd.f32 %v1572_v52, %v1482_v21 }
 0x3cb   : > { %v1625_v3 = vmax.f32 %v1573_v0, 0.0 }
 0x3cd   : > { %v1634_v4 = vpack.c.bf16 %v1625_v3, %v1624_v2 }
 0x3cf   : > { %2327 = vmatmul.msk.bf16.gmra.mxu0 %vm593_vm1, %v1634_v4 }
 0x3d0   : > { %v1575_v5 = vpop.f32.mrf.mxu3 }
 0x3d1   : > { %v1576_v6 = vadd.f32 %v1575_v5, %v1482_v21 }
 0x3d3   : > { %v1626_v10 = vmax.f32 %v1576_v6, 0.0 }
 0x3d8   : > { %v1577_v7 = vpop.f32.mrf.mxu3 }
 0x3d9   : > { %v1578_v8 = vadd.f32 %v1577_v7, %v1482_v21 }
 0x3db   : > { %v1627_v11 = vmax.f32 %v1578_v8, 0.0 }
 0x3dd   : > { %v1635_v13 = vpack.c.bf16 %v1627_v11, %v1626_v10 }
 0x3df   : > { %2328 = vmatmul.msk.bf16.gmra.mxu0 %vm593_vm1, %v1635_v13 }
 0x3ec   : > { %v1686_v15 = vpop.f32.mrf.mxu0 }
 0x3ed   : > { %v1687_v12 = vadd.f32 %v1686_v15, %v2902_v14 }
 0x3ef   : > { %v1726_v17 = vmax.f32 %v1687_v12, 0.0 }
 0x3f1   : > { %v1746_v18 = vmul.f32 %v2908_v16, %v1726_v17 }
 0x3f3   : > { %v1763_v19 = vsel %vm1762_vm3, %v1746_v18, 0.0 }
 0x3f4   : > { %v1688_v20 = vpop.f32.mrf.mxu0  ;;  %1764 = vadd.xlane.f32.xlu0 %v1763_v19 }
 0x3f5   : > { %v1689_v21 = vadd.f32 %v1688_v20, %v2902_v14 }
 0x3f7   : > { %v1727_v22 = vmax.f32 %v1689_v21, 0.0 }
 0x3f9   : > { %v1747_v23 = vmul.f32 %v2908_v16, %v1727_v22 }
 0x3fb   : > { %v1766_v24 = vsel %vm1762_vm3, %v1747_v23, 0.0 }
 0x3fc   : > { %v1691_v25 = vpop.f32.mrf.mxu0  ;;  %1767 = vadd.xlane.f32.xlu0 %v1766_v24 }
 0x3fd   : > { %v1692_v26 = vadd.f32 %v1691_v25, %v2902_v14 }
 0x3ff   : > { %v1728_v27 = vmax.f32 %v1692_v26, 0.0 }
 0x401   : > { %v1748_v61 = vmul.f32 %v2908_v16, %v1728_v27 }
 0x403   : > { %v1769_v28 = vsel %vm1762_vm3, %v1748_v61, 0.0 }
 0x404   : > { %v1693_v29 = vpop.f32.mrf.mxu0  ;;  %1770 = vadd.xlane.f32.xlu1 %v1769_v28 }
 0x405   : > { %v1694_v30 = vadd.f32 %v1693_v29, %v2902_v14  ;;  %v2958_v29 = vld [vmem:[%s3028_s9 + $0x7] ss:$0 sm:$0xff] }
 0x407   : > { %v1729_v31 = vmax.f32 %v1694_v30, 0.0 }
 0x409   : > { %v1749_v32 = vmul.f32 %v2908_v16, %v1729_v31 }
 0x40b   : > { %v1772_v33 = vsel %vm1762_vm3, %v1749_v32, 0.0 }
 0x40c   : > { %v1696_v34 = vpop.f32.mrf.mxu0  ;;  %1773 = vadd.xlane.f32.xlu1 %v1772_v33 }
 0x40d   : > { %v1697_v35 = vadd.f32 %v1696_v34, %v2902_v14 }
 0x40f   : > { %v1730_v36 = vmax.f32 %v1697_v35, 0.0 }
 0x411   : > { %v1750_v37 = vmul.f32 %v2908_v16, %v1730_v36 }
 0x413   : > { %v1775_v38 = vsel %vm1762_vm3, %v1750_v37, 0.0 }
 0x414   : > { %v1698_v39 = vpop.f32.mrf.mxu0  ;;  %1776 = vadd.xlane.f32.xlu2 %v1775_v38 }
 0x415   : > { %v1699_v40 = vadd.f32 %v1698_v39, %v2902_v14 }
 0x417   : > { %v1731_v41 = vmax.f32 %v1699_v40, 0.0 }
 0x419   : > { %v1751_v42 = vmul.f32 %v2908_v16, %v1731_v41 }
 0x41b   : > { %v1778_v43 = vsel %vm1762_vm3, %v1751_v42, 0.0 }
 0x41c   : > { %v1701_v44 = vpop.f32.mrf.mxu0  ;;  %1779 = vadd.xlane.f32.xlu2 %v1778_v43 }
 0x41d   : > { %v1702_v45 = vadd.f32 %v1701_v44, %v2902_v14 }
 0x41f   : > { %v1732_v46 = vmax.f32 %v1702_v45, 0.0 }
 0x421   : > { %v1752_v9 = vmul.f32 %v2908_v16, %v1732_v46 }
 0x423   : > { %v1781_v47 = vsel %vm1762_vm3, %v1752_v9, 0.0 }
 0x424   : > { %v1703_v48 = vpop.f32.mrf.mxu0  ;;  %1782 = vadd.xlane.f32.xlu0 %v1781_v47 }
 0x425   : > { %v1704_v49 = vadd.f32 %v1703_v48, %v2902_v14 }
 0x427   : > { %v1733_v50 = vmax.f32 %v1704_v49, 0.0 }
 0x429   : > { %v1753_v51 = vmul.f32 %v2908_v16, %v1733_v50 }
 0x42b   : > { %v1784_v53 = vsel %vm1762_vm3, %v1753_v51, 0.0 }
 0x42c   : > { %v1706_v54 = vpop.f32.mrf.mxu0  ;;  %1785 = vadd.xlane.f32.xlu1 %v1784_v53 }
 0x42d   : > { %v1707_v55 = vadd.f32 %v1706_v54, %v2902_v14 }
 0x42f   : > { %v1734_v56 = vmax.f32 %v1707_v55, 0.0 }
 0x431   : > { %v1754_v57 = vmul.f32 %v2908_v16, %v1734_v56 }
 0x433   : > { %v1787_v58 = vsel %vm1762_vm3, %v1754_v57, 0.0 }
 0x434   : > { %v1708_v59 = vpop.f32.mrf.mxu0  ;;  %1788 = vadd.xlane.f32.xlu2 %v1787_v58 }
 0x435   : > { %v1709_v1 = vadd.f32 %v1708_v59, %v2902_v14 }
 0x437   : > { %v1735_v60 = vmax.f32 %v1709_v1, 0.0 }
 0x439   : > { %v1755_v62 = vmul.f32 %v2908_v16, %v1735_v60 }
 0x43b   : > { %v1790_v63 = vsel %vm1762_vm3, %v1755_v62, 0.0 }
 0x43c   : > { %v1711_v52 = vpop.f32.mrf.mxu0  ;;  %1791 = vadd.xlane.f32.xlu0 %v1790_v63 }
 0x43d   : > { %v1712_v0 = vadd.f32 %v1711_v52, %v2902_v14 }
 0x43f   : > { %v1736_v2 = vmax.f32 %v1712_v0, 0.0 }
 0x441   : > { %v1756_v3 = vmul.f32 %v2908_v16, %v1736_v2 }
 0x443   : > { %v1793_v4 = vsel %vm1762_vm3, %v1756_v3, 0.0 }
 0x444   : > { %v1713_v5 = vpop.f32.mrf.mxu0  ;;  %1794 = vadd.xlane.f32.xlu1 %v1793_v4 }
 0x445   : > { %v1714_v6 = vadd.f32 %v1713_v5, %v2902_v14 }
 0x447   : > { %v1737_v7 = vmax.f32 %v1714_v6, 0.0 }
 0x449   : > { %v1757_v8 = vmul.f32 %v2908_v16, %v1737_v7 }
 0x44b   : > { %v1796_v10 = vsel %vm1762_vm3, %v1757_v8, 0.0 }
 0x44c   : > { %v1716_v11 = vpop.f32.mrf.mxu0  ;;  %1797 = vadd.xlane.f32.xlu2 %v1796_v10 }
 0x44d   : > { %v1717_v13 = vadd.f32 %v1716_v11, %v2902_v14 }
 0x44f   : > { %v1738_v15 = vmax.f32 %v1717_v13, 0.0 }
 0x451   : > { %v1758_v12 = vmul.f32 %v2908_v16, %v1738_v15 }
 0x453   : > { %v1799_v17 = vsel %vm1762_vm3, %v1758_v12, 0.0 }
 0x454   : > { %v1718_v18 = vpop.f32.mrf.mxu0  ;;  %1800 = vadd.xlane.f32.xlu0 %v1799_v17 }
 0x455   : > { %v1719_v19 = vadd.f32 %v1718_v18, %v2902_v14 }
 0x457   : > { %v1739_v20 = vmax.f32 %v1719_v19, 0.0 }
 0x459   : > { %v1759_v21 = vmul.f32 %v2908_v16, %v1739_v20 }
 0x45b   : > { %v1802_v22 = vsel %vm1762_vm3, %v1759_v21, 0.0 }
 0x45c   : > { %v1721_v23 = vpop.f32.mrf.mxu0  ;;  %1803 = vadd.xlane.f32.xlu1 %v1802_v22 }
 0x45d   : > { %v1722_v24 = vadd.f32 %v1721_v23, %v2902_v14 }
 0x45f   : > { %v1740_v25 = vmax.f32 %v1722_v24, 0.0 }
 0x461   : > { %v1760_v26 = vmul.f32 %v2908_v16, %v1740_v25 }
 0x463   : > { %v1805_v27 = vsel %vm1762_vm3, %v1760_v26, 0.0 }
 0x464   : > { %v1723_v61 = vpop.f32.mrf.mxu0  ;;  %1806 = vadd.xlane.f32.xlu2 %v1805_v27 }
 0x465   : > { %v1724_v28 = vadd.f32 %v1723_v61, %v2902_v14 }
 0x467   : > { %v1741_v30 = vmax.f32 %v1724_v28, 0.0  ;;  %v1765_v31 = vpop.xlane.xlu0 %1764 }
 0x468   : > { %v1812_v32 = vadd.f32 %v2958_v29, %v1765_v31 }
 0x469   : > { %v1761_v33 = vmul.f32 %v2908_v16, %v1741_v30 }
 0x46a   : > { %v1828_v34 = vand.u32 2147483647, %v1812_v32  ;;  %vm1924_vm5 = vcmp.ge.f32.partialorder %v1812_v32, 0.0 }
 0x46b   : > { %v1808_v35 = vsel %vm1762_vm3, %v1761_v33, 0.0 }
 0x46c   : > { %v1844_v36 = vsub.f32 0.0, %v1828_v34  ;;  %1809 = vadd.xlane.f32.xlu0 %v1808_v35 }
 0x46e   : > { %v1860_v37 = vmul.f32 1.442695, %v1844_v36 }
 0x46f   : > { %v1768_v38 = vpop.xlane.xlu0 %1767 }
 0x470   : > { %2413 = vpow2.f32 %v1860_v37  ;;  %v1813_v14 = vadd.f32 %v2958_v29, %v1768_v38 }
 0x472   : > { %v1829_v39 = vand.u32 2147483647, %v1813_v14  ;;  %vm1925_vm6 = vcmp.ge.f32.partialorder %v1813_v14, 0.0 }
 0x474   : > { %v1845_v40 = vsub.f32 0.0, %v1829_v39 }
 0x476   : > { %v2414_v41 = vpop.eup %2413  ;;  %v1862_v42 = vmul.f32 1.442695, %v1845_v40 }
 0x477   : > { %v1892_v43 = vadd.f32 1.0, %v2414_v41  ;;  %v1771_v44 = vpop.xlane.xlu1 %1770 }
 0x478   : > { %2415 = vpow2.f32 %v1862_v42  ;;  %v1814_v16 = vadd.f32 %v2958_v29, %v1771_v44 }
 0x479   : > { %2417 = vrcp.f32 %v1892_v43 }
 0x47a   : > { %v1830_v45 = vand.u32 2147483647, %v1814_v16  ;;  %vm1926_vm7 = vcmp.ge.f32.partialorder %v1814_v16, 0.0 }
 0x47c   : > { %v1846_v46 = vsub.f32 0.0, %v1830_v45 }
 0x47e   : > { %v2416_v9 = vpop.eup %2415  ;;  %v1864_v47 = vmul.f32 1.442695, %v1846_v46 }
 0x47f   : > { %v2418_v48 = vpop.eup %2417  ;;  %v1893_v49 = vadd.f32 1.0, %v2416_v9  ;;  %v1774_v50 = vpop.xlane.xlu1 %1773 }
 0x480   : > { %v1940_v51 = vmul.f32 %v2418_v48, %v2414_v41  ;;  %2419 = vpow2.f32 %v1864_v47  ;;  %v1815_v53 = vadd.f32 %v2958_v29, %v1774_v50 }
 0x481   : > { %2421 = vrcp.f32 %v1893_v49 }
 0x482   : > { %v1956_v54 = vsel %vm1924_vm5, %v2418_v48, %v1940_v51  ;;  %v1831_v55 = vand.u32 2147483647, %v1815_v53  ;;  %vm1927_vm8 = vcmp.ge.f32.partialorder %v1815_v53, 0.0 }
 0x483   : > { %1973 = vst.msk [vmem:[%s2969_s19] sm:$0xff] %vm1972_vm4, %v1956_v54 }
 0x484   : > { %v1847_v56 = vsub.f32 0.0, %v1831_v55 }
 0x486   : > { %v2420_v57 = vpop.eup %2419  ;;  %v1866_v58 = vmul.f32 1.442695, %v1847_v56 }
 0x487   : > { %v2422_v59 = vpop.eup %2421  ;;  %v1894_v1 = vadd.f32 1.0, %v2420_v57  ;;  %v1777_v60 = vpop.xlane.xlu2 %1776 }
 0x488   : > { %v1941_v62 = vmul.f32 %v2422_v59, %v2416_v9  ;;  %2423 = vpow2.f32 %v1866_v58  ;;  %v1816_v63 = vadd.f32 %v2958_v29, %v1777_v60 }
 0x489   : > { %2425 = vrcp.f32 %v1894_v1 }
 0x48a   : > { %v1957_v52 = vsel %vm1925_vm6, %v2422_v59, %v1941_v62  ;;  %v1832_v0 = vand.u32 2147483647, %v1816_v63  ;;  %vm1928_vm9 = vcmp.ge.f32.partialorder %v1816_v63, 0.0 }
 0x48b   : > { %1974 = vst.msk [vmem:[%s2969_s19 + $0x8] sm:$0xff] %vm1972_vm4, %v1957_v52 }
 0x48c   : > { %v1848_v2 = vsub.f32 0.0, %v1832_v0 }
 0x48e   : > { %v2424_v3 = vpop.eup %2423  ;;  %v1868_v4 = vmul.f32 1.442695, %v1848_v2 }
 0x48f   : > { %v2426_v5 = vpop.eup %2425  ;;  %v1895_v6 = vadd.f32 1.0, %v2424_v3  ;;  %v1780_v7 = vpop.xlane.xlu2 %1779 }
 0x490   : > { %v1942_v8 = vmul.f32 %v2426_v5, %v2420_v57  ;;  %2427 = vpow2.f32 %v1868_v4  ;;  %v1817_v10 = vadd.f32 %v2958_v29, %v1780_v7 }
 0x491   : > { %2429 = vrcp.f32 %v1895_v6 }
 0x492   : > { %v1958_v11 = vsel %vm1926_vm7, %v2426_v5, %v1942_v8  ;;  %v1833_v13 = vand.u32 2147483647, %v1817_v10  ;;  %vm1929_vm10 = vcmp.ge.f32.partialorder %v1817_v10, 0.0 }
 0x493   : > { %1975 = vst.msk [vmem:[%s2969_s19 + $0x10] sm:$0xff] %vm1972_vm4, %v1958_v11 }
 0x494   : > { %v1849_v15 = vsub.f32 0.0, %v1833_v13 }
 0x496   : > { %v2428_v12 = vpop.eup %2427  ;;  %v1870_v17 = vmul.f32 1.442695, %v1849_v15 }
 0x497   : > { %v2430_v18 = vpop.eup %2429  ;;  %v1896_v19 = vadd.f32 1.0, %v2428_v12  ;;  %v1783_v20 = vpop.xlane.xlu0 %1782 }
 0x498   : > { %v1943_v21 = vmul.f32 %v2430_v18, %v2424_v3  ;;  %2431 = vpow2.f32 %v1870_v17  ;;  %v1818_v22 = vadd.f32 %v2958_v29, %v1783_v20 }
 0x499   : > { %2433 = vrcp.f32 %v1896_v19 }
 0x49a   : > { %v1959_v23 = vsel %vm1927_vm8, %v2430_v18, %v1943_v21  ;;  %v1834_v24 = vand.u32 2147483647, %v1818_v22  ;;  %vm1930_vm11 = vcmp.ge.f32.partialorder %v1818_v22, 0.0 }
 0x49b   : > { %1976 = vst.msk [vmem:[%s2969_s19 + $0x18] sm:$0xff] %vm1972_vm4, %v1959_v23 }
 0x49c   : > { %v1850_v25 = vsub.f32 0.0, %v1834_v24 }
 0x49e   : > { %v2432_v26 = vpop.eup %2431  ;;  %v1872_v27 = vmul.f32 1.442695, %v1850_v25 }
 0x49f   : > { %v2434_v61 = vpop.eup %2433  ;;  %v1897_v28 = vadd.f32 1.0, %v2432_v26  ;;  %v1786_v30 = vpop.xlane.xlu1 %1785 }
 0x4a0   : > { %v1944_v31 = vmul.f32 %v2434_v61, %v2428_v12  ;;  %2435 = vpow2.f32 %v1872_v27  ;;  %v1819_v32 = vadd.f32 %v2958_v29, %v1786_v30 }
 0x4a1   : > { %2437 = vrcp.f32 %v1897_v28 }
 0x4a2   : > { %v1960_v33 = vsel %vm1928_vm9, %v2434_v61, %v1944_v31  ;;  %v1835_v34 = vand.u32 2147483647, %v1819_v32  ;;  %vm1931_vm12 = vcmp.ge.f32.partialorder %v1819_v32, 0.0 }
 0x4a3   : > { %1977 = vst.msk [vmem:[%s2969_s19 + $0x20] sm:$0xff] %vm1972_vm4, %v1960_v33 }
 0x4a4   : > { %v1851_v35 = vsub.f32 0.0, %v1835_v34 }
 0x4a6   : > { %v2436_v36 = vpop.eup %2435  ;;  %v1874_v37 = vmul.f32 1.442695, %v1851_v35 }
 0x4a7   : > { %v2438_v38 = vpop.eup %2437  ;;  %v1898_v14 = vadd.f32 1.0, %v2436_v36  ;;  %v1789_v39 = vpop.xlane.xlu2 %1788 }
 0x4a8   : > { %v1945_v40 = vmul.f32 %v2438_v38, %v2432_v26  ;;  %2439 = vpow2.f32 %v1874_v37  ;;  %v1820_v41 = vadd.f32 %v2958_v29, %v1789_v39 }
 0x4a9   : > { %2441 = vrcp.f32 %v1898_v14 }
 0x4aa   : > { %v1961_v42 = vsel %vm1929_vm10, %v2438_v38, %v1945_v40  ;;  %v1836_v43 = vand.u32 2147483647, %v1820_v41  ;;  %vm1932_vm13 = vcmp.ge.f32.partialorder %v1820_v41, 0.0 }
 0x4ab   : > { %1978 = vst.msk [vmem:[%s2969_s19 + $0x28] sm:$0xff] %vm1972_vm4, %v1961_v42 }
 0x4ac   : > { %v1852_v44 = vsub.f32 0.0, %v1836_v43 }
 0x4ae   : > { %v2440_v16 = vpop.eup %2439  ;;  %v1876_v45 = vmul.f32 1.442695, %v1852_v44 }
 0x4af   : > { %v2442_v46 = vpop.eup %2441  ;;  %v1899_v9 = vadd.f32 1.0, %v2440_v16  ;;  %v1792_v47 = vpop.xlane.xlu0 %1791 }
 0x4b0   : > { %v1946_v48 = vmul.f32 %v2442_v46, %v2436_v36  ;;  %2443 = vpow2.f32 %v1876_v45  ;;  %v1821_v49 = vadd.f32 %v2958_v29, %v1792_v47 }
 0x4b1   : > { %2445 = vrcp.f32 %v1899_v9 }
 0x4b2   : > { %v1962_v50 = vsel %vm1930_vm11, %v2442_v46, %v1946_v48  ;;  %v1837_v51 = vand.u32 2147483647, %v1821_v49  ;;  %vm1933_vm14 = vcmp.ge.f32.partialorder %v1821_v49, 0.0 }
 0x4b3   : > { %1979 = vst.msk [vmem:[%s2969_s19 + $0x30] sm:$0xff] %vm1972_vm4, %v1962_v50 }
 0x4b4   : > { %v1853_v53 = vsub.f32 0.0, %v1837_v51 }
 0x4b6   : > { %v2444_v54 = vpop.eup %2443  ;;  %v1878_v55 = vmul.f32 1.442695, %v1853_v53 }
 0x4b7   : > { %v2446_v56 = vpop.eup %2445  ;;  %v1900_v57 = vadd.f32 1.0, %v2444_v54  ;;  %v1795_v58 = vpop.xlane.xlu1 %1794 }
 0x4b8   : > { %v1947_v59 = vmul.f32 %v2446_v56, %v2440_v16  ;;  %2447 = vpow2.f32 %v1878_v55  ;;  %v1822_v1 = vadd.f32 %v2958_v29, %v1795_v58 }
 0x4b9   : > { %2449 = vrcp.f32 %v1900_v57 }
 0x4ba   : > { %v1963_v60 = vsel %vm1931_vm12, %v2446_v56, %v1947_v59  ;;  %v1838_v62 = vand.u32 2147483647, %v1822_v1  ;;  %vm1934_vm15 = vcmp.ge.f32.partialorder %v1822_v1, 0.0 }
 0x4bb   : > { %1980 = vst.msk [vmem:[%s2969_s19 + $0x38] sm:$0xff] %vm1972_vm4, %v1963_v60 }
 0x4bc   : > { %v1854_v63 = vsub.f32 0.0, %v1838_v62 }
 0x4be   : > { %v2448_v52 = vpop.eup %2447  ;;  %v1880_v0 = vmul.f32 1.442695, %v1854_v63 }
 0x4bf   : > { %v2450_v2 = vpop.eup %2449  ;;  %v1901_v3 = vadd.f32 1.0, %v2448_v52  ;;  %v1798_v4 = vpop.xlane.xlu2 %1797 }
 0x4c0   : > { %v1948_v5 = vmul.f32 %v2450_v2, %v2444_v54  ;;  %2451 = vpow2.f32 %v1880_v0  ;;  %v1823_v6 = vadd.f32 %v2958_v29, %v1798_v4 }
 0x4c1   : > { %2453 = vrcp.f32 %v1901_v3 }
 0x4c2   : > { %v1964_v7 = vsel %vm1932_vm13, %v2450_v2, %v1948_v5  ;;  %v1839_v8 = vand.u32 2147483647, %v1823_v6  ;;  %vm1935_vm0 = vcmp.ge.f32.partialorder %v1823_v6, 0.0 }
 0x4c3   : > { %1981 = vst.msk [vmem:[%s2969_s19 + $0x40] sm:$0xff] %vm1972_vm4, %v1964_v7 }
 0x4c4   : > { %v1855_v10 = vsub.f32 0.0, %v1839_v8 }
 0x4c6   : > { %v2452_v11 = vpop.eup %2451  ;;  %v1882_v13 = vmul.f32 1.442695, %v1855_v10 }
 0x4c7   : > { %v2454_v15 = vpop.eup %2453  ;;  %v1902_v12 = vadd.f32 1.0, %v2452_v11  ;;  %v1801_v17 = vpop.xlane.xlu0 %1800 }
 0x4c8   : > { %v1949_v18 = vmul.f32 %v2454_v15, %v2448_v52  ;;  %2455 = vpow2.f32 %v1882_v13  ;;  %v1824_v19 = vadd.f32 %v2958_v29, %v1801_v17 }
 0x4c9   : > { %2457 = vrcp.f32 %v1902_v12 }
 0x4ca   : > { %v1965_v20 = vsel %vm1933_vm14, %v2454_v15, %v1949_v18  ;;  %v1840_v21 = vand.u32 2147483647, %v1824_v19  ;;  %vm1936_vm1 = vcmp.ge.f32.partialorder %v1824_v19, 0.0 }
 0x4cb   : > { %1982 = vst.msk [vmem:[%s2969_s19 + $0x48] sm:$0xff] %vm1972_vm4, %v1965_v20 }
 0x4cc   : > { %v1856_v22 = vsub.f32 0.0, %v1840_v21 }
 0x4ce   : > { %v2456_v23 = vpop.eup %2455  ;;  %v1884_v24 = vmul.f32 1.442695, %v1856_v22 }
 0x4cf   : > { %v2458_v25 = vpop.eup %2457  ;;  %v1903_v26 = vadd.f32 1.0, %v2456_v23  ;;  %v1804_v27 = vpop.xlane.xlu1 %1803 }
 0x4d0   : > { %v1950_v61 = vmul.f32 %v2458_v25, %v2452_v11  ;;  %2459 = vpow2.f32 %v1884_v24  ;;  %v1825_v28 = vadd.f32 %v2958_v29, %v1804_v27 }
 0x4d1   : > { %2461 = vrcp.f32 %v1903_v26 }
 0x4d2   : > { %v1966_v30 = vsel %vm1934_vm15, %v2458_v25, %v1950_v61  ;;  %v1841_v31 = vand.u32 2147483647, %v1825_v28  ;;  %vm1937_vm2 = vcmp.ge.f32.partialorder %v1825_v28, 0.0 }
 0x4d3   : > { %1983 = vst.msk [vmem:[%s2969_s19 + $0x50] sm:$0xff] %vm1972_vm4, %v1966_v30 }
 0x4d4   : > { %v1857_v32 = vsub.f32 0.0, %v1841_v31 }
 0x4d6   : > { %v2460_v33 = vpop.eup %2459  ;;  %v1886_v34 = vmul.f32 1.442695, %v1857_v32 }
 0x4d7   : > { %v2462_v35 = vpop.eup %2461  ;;  %v1904_v36 = vadd.f32 1.0, %v2460_v33  ;;  %v1807_v37 = vpop.xlane.xlu2 %1806 }
 0x4d8   : > { %v1951_v38 = vmul.f32 %v2462_v35, %v2456_v23  ;;  %2463 = vpow2.f32 %v1886_v34  ;;  %v1826_v14 = vadd.f32 %v2958_v29, %v1807_v37 }
 0x4d9   : > { %2465 = vrcp.f32 %v1904_v36 }
 0x4da   : > { %v1967_v39 = vsel %vm1935_vm0, %v2462_v35, %v1951_v38  ;;  %v1842_v40 = vand.u32 2147483647, %v1826_v14  ;;  %vm1938_vm3 = vcmp.ge.f32.partialorder %v1826_v14, 0.0 }
 0x4db   : > { %1984 = vst.msk [vmem:[%s2969_s19 + $0x58] sm:$0xff] %vm1972_vm4, %v1967_v39 }
 0x4dc   : > { %v1858_v41 = vsub.f32 0.0, %v1842_v40 }
 0x4de   : > { %v2464_v42 = vpop.eup %2463  ;;  %v1888_v43 = vmul.f32 1.442695, %v1858_v41 }
 0x4df   : > { %v2466_v44 = vpop.eup %2465  ;;  %v1905_v16 = vadd.f32 1.0, %v2464_v42  ;;  %v1810_v45 = vpop.xlane.xlu0 %1809 }
 0x4e0   : > { %v1952_v46 = vmul.f32 %v2466_v44, %v2460_v33  ;;  %2467 = vpow2.f32 %v1888_v43  ;;  %v1827_v9 = vadd.f32 %v2958_v29, %v1810_v45 }
 0x4e1   : > { %2469 = vrcp.f32 %v1905_v16 }
 0x4e2   : > { %v1968_v47 = vsel %vm1936_vm1, %v2466_v44, %v1952_v46  ;;  %v1843_v48 = vand.u32 2147483647, %v1827_v9  ;;  %vm1939_vm5 = vcmp.ge.f32.partialorder %v1827_v9, 0.0 }
 0x4e3   : > { %1985 = vst.msk [vmem:[%s2969_s19 + $0x60] sm:$0xff] %vm1972_vm4, %v1968_v47 }
 0x4e4   : > { %v1859_v49 = vsub.f32 0.0, %v1843_v48 }
 0x4e6   : > { %v2468_v50 = vpop.eup %2467  ;;  %v1890_v51 = vmul.f32 1.442695, %v1859_v49 }
 0x4e7   : > { %v2470_v53 = vpop.eup %2469  ;;  %v1906_v54 = vadd.f32 1.0, %v2468_v50 }
 0x4e8   : > { %v1953_v55 = vmul.f32 %v2470_v53, %v2464_v42  ;;  %2471 = vpow2.f32 %v1890_v51 }
 0x4e9   : > { %2473 = vrcp.f32 %v1906_v54 }
 0x4ea   : > { %v1969_v56 = vsel %vm1937_vm2, %v2470_v53, %v1953_v55 }
 0x4eb   : > { %1986 = vst.msk [vmem:[%s2969_s19 + $0x68] sm:$0xff] %vm1972_vm4, %v1969_v56 }
 0x4ee   : > { %v2472_v29 = vpop.eup %2471 }
 0x4ef   : > { %v2474_v57 = vpop.eup %2473  ;;  %v1907_v58 = vadd.f32 1.0, %v2472_v29 }
 0x4f0   : > { %v1954_v59 = vmul.f32 %v2474_v57, %v2468_v50 }
 0x4f1   : > { %2475 = vrcp.f32 %v1907_v58 }
 0x4f2   : > { %v1970_v1 = vsel %vm1938_vm3, %v2474_v57, %v1954_v59 }
 0x4f3   : > { %1987 = vst.msk [vmem:[%s2969_s19 + $0x70] sm:$0xff] %vm1972_vm4, %v1970_v1 }
 0x4f7   : > { %v2476_v60 = vpop.eup %2475 }
 0x4f8   : > { %v1955_v62 = vmul.f32 %v2476_v60, %v2472_v29 }
 0x4fa   : > { %v1971_v63 = vsel %vm1939_vm5, %v2476_v60, %v1955_v62 }
 0x4fb   : > { %1988 = vst.msk [vmem:[%s2969_s19 + $0x78] sm:$0xff] %vm1972_vm4, %v1971_v63 }
 0x4fc PF: > { %s21_s13 = sadd.s32 1, %s2517_s13  }
 0x4fd   : > { %p18_p7 = scmp.ge.s32.totalorder %s21_s13, 4  }
 0x4ff   :  { %20 = sbr.rel (!%p18_p7) target bundleno = 1 (0x1), region = 96 }
 0x504   :  { %2011 = vsyncpa [#allocation3], 1 }
 0x505   :  { %2013 = vsyncpa [#allocation3 + $0x1], 1 }

</bundles_post_ra>
